<compile_context>
chip_gen: v5e
topology: v5e:2x2
jax: 0.10.0
libtpu: 0.0.40
codegen_flags: <defaults>
</compile_context>

<pallas_src>
import numpy as np
import jax
import jax.numpy as jnp
from jax import lax
from jax.experimental import pallas as pl
from jax.experimental.pallas import tpu as pltpu

# ---- hyper-parameters of the inner Mamba2-style block (small, synthetic) ----
D_MODEL = 32
EXPAND = 2
D_INNER = EXPAND * D_MODEL              # 64
D_STATE = 16
NHEADS = 4
HEADDIM = D_INNER // NHEADS             # 16
D_CONV = 4

CONVW = D_INNER + 2 * D_STATE           # 96  channels that go through the causal conv
PROJ_USED = CONVW + D_INNER + NHEADS    # 164 = [xc | B | C] + z + dt
FPROJ = ((PROJ_USED + 127) // 128) * 128  # 256: lane-dense fused projection width
Z0, Z1 = CONVW, CONVW + D_INNER         # z columns in the fused projection
DT0, DT1 = Z1, Z1 + NHEADS              # dt columns in the fused projection
CHUNK_MAX = 128                         # SSD chunk length


def _silu(v):
    return v * (1.0 / (1.0 + jnp.exp(-v)))


def _softplus(v):
    # stable softplus: log(1+exp(v)) overflows for large v
    return jnp.maximum(v, 0.0) + jnp.log(1.0 + jnp.exp(-jnp.abs(v)))


def _mamba_kernel(x_ref, wf_ref, cw_ref, cbias_ref, dtb_ref, alog_ref,
                  dfull_ref, gnorm_ref, wout_ref,
                  o_ref,
                  state_scr, convbuf_scr):
    """Processes one (chunk, d_model) tile of one batch row.

    grid = (batch, n_chunks); state_scr (SSM state) and convbuf_scr rows [0:3]
    (conv history) are carried across the chunk axis and reset at chunk 0.
    """
    C = x_ref.shape[0]                                   # chunk length (static)

    @pl.when(pl.program_id(1) == 0)
    def _():
        state_scr[...] = jnp.zeros_like(state_scr)
        convbuf_scr[...] = jnp.zeros_like(convbuf_scr)

    x = x_ref[...].astype(jnp.float32)                   # (C, D_MODEL)

    # --- single fused, lane-dense input projection: [xc | B | C | z | dt | pad] ---
    proj = jnp.dot(x, wf_ref[...], preferred_element_type=jnp.float32)   # (C, 256)
    conv_in = proj[:, 0:CONVW]                           # (C, 96)
    z = proj[:, Z0:Z1]                                   # (C, 64)
    dtr = proj[:, DT0:DT1]                               # (C, NHEADS)

    # --- depthwise causal conv1d (k=4) as 4 shifted adds via a VMEM history buffer ---
    # buffer rows [0:3] = last 3 pre-conv rows of the previous chunk, rows [3:3+C] = this chunk
    convbuf_scr[D_CONV - 1:D_CONV - 1 + C, :] = conv_in
    cw = cw_ref[...]                                     # (4, 96)
    acc = jnp.zeros((C, CONVW), jnp.float32) + cbias_ref[...]
    for k in range(D_CONV):                              # out[t] = b + sum_k w[k]*in[t-(3-k)]
        acc = acc + convbuf_scr[k:k + C, :] * cw[k:k + 1, :]
    # stash the last 3 rows as the next chunk's conv history
    tail = convbuf_scr[C:C + D_CONV - 1, :]
    convbuf_scr[0:D_CONV - 1, :] = tail

    conv_act = _silu(acc)
    x_act = conv_act[:, 0:D_INNER]                       # (C, 64)
    b_act = conv_act[:, D_INNER:D_INNER + D_STATE]       # (C, 16)
    c_act = conv_act[:, D_INNER + D_STATE:CONVW]         # (C, 16)

    # --- dt / per-head log-decay (scalar A per head, Mamba2 style) ---
    dt = _softplus(dtr + dtb_ref[...])                   # (C, NHEADS)
    a_log = dt * (-jnp.exp(alog_ref[...]))               # (C, NHEADS), negative

    # triangular masks built in-kernel from iota (no host-side O(S^2) tensors)
    row_idx = lax.broadcasted_iota(jnp.int32, (C, C), 0)
    col_idx = lax.broadcasted_iota(jnp.int32, (C, C), 1)
    mask_low = col_idx <= row_idx
    tri_low = mask_low.astype(jnp.float32)
    tri_up = (row_idx <= col_idx).astype(jnp.float32)

    # inclusive cumulative log-decay within the chunk, column (C,H) and row (H,C) layouts
    cs_col = jnp.dot(tri_low, a_log, preferred_element_type=jnp.float32)        # (C, H)
    cs_row = lax.dot_general(a_log, tri_up, (((0,), (0,)), ((), ())),
                             preferred_element_type=jnp.float32)                # (H, C)

    # shared C_i . B_j Gram matrix (B/C are shared across heads)
    cbt = lax.dot_general(c_act, b_act, (((1,), (1,)), ((), ())),
                          preferred_element_type=jnp.float32)                   # (C, C)

    state = state_scr[...]                               # (D_STATE, D_INNER)
    y_heads, s_heads = [], []
    for h in range(NHEADS):                              # static unroll, 4 heads
        sl = slice(h * HEADDIM, (h + 1) * HEADDIM)
        dtx = dt[:, h:h + 1] * x_act[:, sl]              # (C, HEADDIM)  dt_t * x_t
        csc = cs_col[:, h:h + 1]                         # (C, 1)
        csr = cs_row[h:h + 1, :]                         # (1, C)
        # decay[i,j] = exp(sum_{k=j+1..i} a_k) for j<=i, 0 otherwise (difference form)
        decay = jnp.exp(jnp.where(mask_low, csc - csr, -1e30))                  # (C, C)
        st_h = state[:, sl]                              # (D_STATE, HEADDIM)
        # intra-chunk term + decayed contribution of the carried state
        y_h = jnp.dot(cbt * decay, dtx, preferred_element_type=jnp.float32)     # (C, HD)
        y_h = y_h + jnp.exp(csc) * jnp.dot(c_act, st_h,
                                           preferred_element_type=jnp.float32)
        y_heads.append(y_h)
        # state carried to the next chunk
        cs_last = csc[C - 1:C, :]                        # (1, 1)
        dte = jnp.exp(cs_last - csc)                     # (C, 1) decay step j -> chunk end
        s_new = jnp.exp(cs_last) * st_h + lax.dot_general(
            b_act, dtx * dte, (((0,), (0,)), ((), ())),
            preferred_element_type=jnp.float32)          # (D_STATE, HEADDIM)
        s_heads.append(s_new)

    y = jnp.concatenate(y_heads, axis=1)                 # (C, D_INNER)
    state_scr[...] = jnp.concatenate(s_heads, axis=1)

    # --- D skip, SiLU(z) gating, gated RMSNorm, output projection ---
    y = y + dfull_ref[...] * x_act
    y = y * _silu(z)
    var = jnp.mean(y * y, axis=-1, keepdims=True)
    y = y * lax.rsqrt(var + 1e-6) * gnorm_ref[...]
    o_ref[...] = jnp.dot(y, wout_ref[...],
                         preferred_element_type=jnp.float32).astype(o_ref.dtype)


def make_params(key):
    ks = jax.random.split(key, 9)

    def init(k, shape, scale):
        return (scale * jax.random.normal(k, shape)).astype(jnp.float32)

    return dict(
        wz=init(ks[0], (D_MODEL, D_INNER), 0.05),
        wx=init(ks[1], (D_MODEL, D_INNER), 0.05),
        wb=init(ks[2], (D_MODEL, D_STATE), 0.05),
        wc=init(ks[3], (D_MODEL, D_STATE), 0.05),
        wdt=init(ks[4], (D_MODEL, NHEADS), 0.05),
        cwx=init(ks[5], (D_CONV, D_INNER), 0.2),
        cwb=init(ks[6], (D_CONV, D_STATE), 0.2),
        cwc=init(ks[7], (D_CONV, D_STATE), 0.2),
        cbx=jnp.zeros((1, D_INNER), jnp.float32),
        cbb=jnp.zeros((1, D_STATE), jnp.float32),
        cbc=jnp.zeros((1, D_STATE), jnp.float32),
        dtb=jnp.log(jnp.expm1(jnp.array([[0.01, 0.02, 0.05, 0.1]], jnp.float32))),
        alog=jnp.log(jnp.arange(1, NHEADS + 1, dtype=jnp.float32))[None, :],
        dskip=jnp.ones((1, NHEADS), jnp.float32),
        gnorm=jnp.ones((1, D_INNER), jnp.float32),
        wout=init(ks[8], (D_INNER, D_MODEL), 0.05),
    )


def _fuse_params(p):
    """Pack projection / conv weights into the fused layouts the kernel expects."""
    pad = jnp.zeros((D_MODEL, FPROJ - PROJ_USED), jnp.float32)
    w_fused = jnp.concatenate([p['wx'], p['wb'], p['wc'], p['wz'], p['wdt'], pad], axis=1)
    cw = jnp.concatenate([p['cwx'], p['cwb'], p['cwc']], axis=1)        # (D_CONV, 96)
    cbias = jnp.concatenate([p['cbx'], p['cbb'], p['cbc']], axis=1)     # (1, 96)
    d_full = jnp.repeat(p['dskip'], HEADDIM, axis=1)                    # (1, D_INNER)
    return w_fused, cw, cbias, d_full


def mamba2_block(xp, params, chunk=CHUNK_MAX):
    """Inner Mamba2-style block. xp: (B, S, D_MODEL) with S a multiple of 8."""
    B, S, _ = xp.shape
    if S <= chunk:
        C, S_pad = S, S
    else:
        C = chunk
        S_pad = ((S + C - 1) // C) * C
        if S_pad > S:                    # extra trailing zero-pad; causal => outputs
            xp = jnp.pad(xp, ((0, 0), (0, S_pad - S), (0, 0)))  # at <S are unchanged
    nc = S_pad // C

    w_fused, cw, cbias, d_full = _fuse_params(params)
    p = params
    args = (xp, w_fused, cw, cbias, p['dtb'], p['alog'], d_full, p['gnorm'], p['wout'])

    def full_spec(a):
        nd = a.ndim
        return pl.BlockSpec(a.shape, lambda b, c, _nd=nd: (0,) * _nd)

    in_specs = [pl.BlockSpec((None, C, D_MODEL), lambda b, c: (b, c, 0))]
    in_specs += [full_spec(a) for a in args[1:]]
    out_spec = pl.BlockSpec((None, C, D_MODEL), lambda b, c: (b, c, 0))

    grid_spec = pltpu.PrefetchScalarGridSpec(
        num_scalar_prefetch=0,
        grid=(B, nc),
        in_specs=in_specs,
        out_specs=out_spec,
        scratch_shapes=[
            pltpu.VMEM((D_STATE, D_INNER), jnp.float32),        # carried SSM state
            pltpu.VMEM((C + D_CONV - 1, CONVW), jnp.float32),   # conv history buffer
        ],
    )
    out = pl.pallas_call(
        _mamba_kernel,
        grid_spec=grid_spec,
        out_shape=jax.ShapeDtypeStruct((B, S_pad, D_MODEL), jnp.float32),
        compiler_params=pltpu.CompilerParams(
            dimension_semantics=("parallel", "arbitrary"),
            vmem_limit_bytes=32 * 1024 * 1024),
    )(*args)
    return out[:, :S, :] if S_pad > S else out


def memory_efficient_mamba(x, params):
    """Forward of MemoryEfficientMamba: pad seq to multiple of 8, run mamba, slice back."""
    B, L, D = x.shape
    pad_seq = (8 - L % 8) % 8
    if pad_seq:
        x = jnp.pad(x, ((0, 0), (0, pad_seq), (0, 0)))
    # transpose(1,2).contiguous().transpose(1,2) and .clone() are stride/layout no-ops in JAX.
    out = mamba2_block(x, params)
    if pad_seq:
        out = out[:, :L, :]
    return out


# ---------------- pure-JAX per-timestep reference (for correctness check) ----------------
def mamba_reference(x, p):
    B, L, D = x.shape
    pad_seq = (8 - L % 8) % 8
    if pad_seq:
        x = jnp.pad(x, ((0, 0), (0, pad_seq), (0, 0)))
    S = x.shape[1]
    hp = lax.Precision.HIGHEST
    z = jnp.einsum('bsd,de->bse', x, p['wz'], precision=hp)
    xc = jnp.einsum('bsd,de->bse', x, p['wx'], precision=hp)
    bm = jnp.einsum('bsd,dn->bsn', x, p['wb'], precision=hp)
    cm = jnp.einsum('bsd,dn->bsn', x, p['wc'], precision=hp)
    dtr = jnp.einsum('bsd,dh->bsh', x, p['wdt'], precision=hp)

    def conv(v, w, b):
        vp = jnp.pad(v, ((0, 0), (D_CONV - 1, 0), (0, 0)))
        acc = jnp.zeros_like(v) + b[None, :, :]
        for k in range(D_CONV):
            acc = acc + vp[:, k:k + S, :] * w[k][None, None, :]
        return acc

    x_act = _silu(conv(xc, p['cwx'], p['cbx']))
    b_act = _silu(conv(bm, p['cwb'], p['cbb']))
    c_act = _silu(conv(cm, p['cwc'], p['cbc']))
    dt = _softplus(dtr + p['dtb'][None, :, :])                      # (B,S,H)
    A = -jnp.exp(p['alog'])                                         # (1,H)
    dA = jnp.exp(dt * A[None, :, :])                                # (B,S,H)
    colx = jnp.repeat(dt, HEADDIM, axis=-1) * x_act                 # (B,S,D_INNER)
    da_full = jnp.repeat(dA, HEADDIM, axis=-1)
    d_full = jnp.repeat(p['dskip'], HEADDIM, axis=-1)               # (1,D_INNER)

    def step(h, inp):
        bt, ct, cx, dat = inp
        h = h * dat[:, None, :] + bt[:, :, None] * cx[:, None, :]
        y = jnp.einsum('bn,bnc->bc', ct, h, precision=hp)
        return h, y

    h0 = jnp.zeros((B, D_STATE, D_INNER), jnp.float32)
    xs = (jnp.swapaxes(b_act, 0, 1), jnp.swapaxes(c_act, 0, 1),
          jnp.swapaxes(colx, 0, 1), jnp.swapaxes(da_full, 0, 1))
    _, ys = lax.scan(step, h0, xs)
    y = jnp.swapaxes(ys, 0, 1) + d_full[None, :, :] * x_act
    y = y * _silu(z)
    var = jnp.mean(y * y, axis=-1, keepdims=True)
    y = y * lax.rsqrt(var + 1e-6) * p['gnorm'][None, :, :]
    out = jnp.einsum('bse,ed->bsd', y, p['wout'], precision=hp)
    if pad_seq:
        out = out[:, :L, :]
    return out


if __name__ == "__main__":
    key = jax.random.PRNGKey(0)
    kx, kp, kx2 = jax.random.split(key, 3)
    params = make_params(kp)
    fwd = jax.jit(memory_efficient_mamba)

    # batch=2, seq=12 (not a multiple of 8 -> exercises the pad/slice wrapper path)
    x = jax.random.normal(kx, (2, 12, D_MODEL), dtype=jnp.float32)
    out = jax.block_until_ready(fwd(x, params))
    assert out.shape == (2, 12, D_MODEL), out.shape
    assert bool(jnp.all(jnp.isfinite(out)))
    ref = jax.block_until_ready(mamba_reference(x, params))
    np.testing.assert_allclose(np.asarray(out), np.asarray(ref), rtol=5e-2, atol=5e-3)

    # batch=2, seq=200 -> two 128-wide chunks; exercises carried SSM state + conv tail
    x2 = jax.random.normal(kx2, (2, 200, D_MODEL), dtype=jnp.float32)
    out2 = jax.block_until_ready(fwd(x2, params))
    assert out2.shape == (2, 200, D_MODEL), out2.shape
    ref2 = jax.block_until_ready(mamba_reference(x2, params))
    np.testing.assert_allclose(np.asarray(out2), np.asarray(ref2), rtol=5e-2, atol=5e-3)

    print("KERNEL_OK")
</pallas_src>

<mosaic_0001>
module attributes {stable_mosaic.version = 11 : i64} {
  func.func @_mamba_kernel(%arg0: i32, %arg1: i32, %arg2: memref<1x16x32xf32, #tpu.memory_space<vmem>>, %arg3: memref<32x256xf32, #tpu.memory_space<vmem>>, %arg4: memref<4x96xf32, #tpu.memory_space<vmem>>, %arg5: memref<1x96xf32, #tpu.memory_space<vmem>>, %arg6: memref<1x4xf32, #tpu.memory_space<vmem>>, %arg7: memref<1x4xf32, #tpu.memory_space<vmem>>, %arg8: memref<1x64xf32, #tpu.memory_space<vmem>>, %arg9: memref<1x64xf32, #tpu.memory_space<vmem>>, %arg10: memref<64x32xf32, #tpu.memory_space<vmem>>, %arg11: memref<1x16x32xf32, #tpu.memory_space<vmem>>, %arg12: memref<16x64xf32, #tpu.memory_space<vmem>>, %arg13: memref<19x96xf32, #tpu.memory_space<vmem>>) attributes {dimension_semantics = [#tpu.dimension_semantics<parallel>, #tpu.dimension_semantics<arbitrary>], iteration_bounds = array<i64: 2, 1>, scalar_prefetch = 0 : i64, scratch_operands = 2 : i64, tpu.core_type = #tpu.core_type<tc>, window_params = [{transform_indices = @transform_0, window_bounds = array<i64: 1, 16, 32>}, {pipeline_mode = #tpu.pipeline_mode<synchronous>, transform_indices = @transform_1, window_bounds = array<i64: 32, 256>}, {pipeline_mode = #tpu.pipeline_mode<synchronous>, transform_indices = @transform_2, window_bounds = array<i64: 4, 96>}, {pipeline_mode = #tpu.pipeline_mode<synchronous>, transform_indices = @transform_3, window_bounds = array<i64: 1, 96>}, {pipeline_mode = #tpu.pipeline_mode<synchronous>, transform_indices = @transform_4, window_bounds = array<i64: 1, 4>}, {pipeline_mode = #tpu.pipeline_mode<synchronous>, transform_indices = @transform_5, window_bounds = array<i64: 1, 4>}, {pipeline_mode = #tpu.pipeline_mode<synchronous>, transform_indices = @transform_6, window_bounds = array<i64: 1, 64>}, {pipeline_mode = #tpu.pipeline_mode<synchronous>, transform_indices = @transform_7, window_bounds = array<i64: 1, 64>}, {pipeline_mode = #tpu.pipeline_mode<synchronous>, transform_indices = @transform_8, window_bounds = array<i64: 64, 32>}, {transform_indices = @transform_9, window_bounds = array<i64: 1, 16, 32>}]} {
    %c0_i32 = arith.constant 0 : i32
    %0 = arith.cmpi eq, %arg1, %c0_i32 : i32
    %1 = arith.extui %0 : i1 to i32
    %c0_i32_0 = arith.constant 0 : i32
    %2 = arith.cmpi ne, %1, %c0_i32_0 : i32
    scf.if %2 {
      %cst_70 = arith.constant 0.000000e+00 : f32
      %238 = vector.broadcast %cst_70 : f32 to vector<16x64xf32>
      %c0_71 = arith.constant 0 : index
      %c0_72 = arith.constant 0 : index
      %239 = vector.load %arg12[%c0_71, %c0_72] : memref<16x64xf32, #tpu.memory_space<vmem>>, vector<16x64xf32>
      tpu.vector_store %arg12[%c0_71, %c0_72], %238 {strides = array<i32>} : memref<16x64xf32, #tpu.memory_space<vmem>>, vector<16x64xf32>,
      %cst_73 = arith.constant 0.000000e+00 : f32
      %240 = vector.broadcast %cst_73 : f32 to vector<19x96xf32>
      %c0_74 = arith.constant 0 : index
      %c0_75 = arith.constant 0 : index
      %241 = vector.load %arg13[%c0_74, %c0_75] : memref<19x96xf32, #tpu.memory_space<vmem>>, vector<19x96xf32>
      tpu.vector_store %arg13[%c0_74, %c0_75], %240 {strides = array<i32>} : memref<19x96xf32, #tpu.memory_space<vmem>>, vector<19x96xf32>,
    } else {
    }
    %c0 = arith.constant 0 : index
    %c0_1 = arith.constant 0 : index
    %c0_2 = arith.constant 0 : index
    %3 = vector.load %arg2[%c0, %c0_1, %c0_2] : memref<1x16x32xf32, #tpu.memory_space<vmem>>, vector<1x16x32xf32>
    %4 = vector.shape_cast %3 : vector<1x16x32xf32> to vector<16x32xf32>
    %c0_3 = arith.constant 0 : index
    %c0_4 = arith.constant 0 : index
    %5 = vector.load %arg3[%c0_3, %c0_4] : memref<32x256xf32, #tpu.memory_space<vmem>>, vector<32x256xf32>
    %cst = arith.constant dense<0.000000e+00> : vector<16x256xf32>
    %6 = tpu.matmul %4, %5, %cst {dimension_numbers = #tpu.dot_dimension_numbers<[1], [0], [0], [1], [0, 0, 1, 1], [], []>} : vector<16x32xf32>, vector<32x256xf32>, vector<16x256xf32> -> vector<16x256xf32>
    %7 = vector.extract_strided_slice %6 {offsets = [0, 0], sizes = [16, 96], strides = [1, 1]} : vector<16x256xf32> to vector<16x96xf32>
    %8 = vector.extract_strided_slice %6 {offsets = [0, 96], sizes = [16, 64], strides = [1, 1]} : vector<16x256xf32> to vector<16x64xf32>
    %9 = vector.extract_strided_slice %6 {offsets = [0, 160], sizes = [16, 4], strides = [1, 1]} : vector<16x256xf32> to vector<16x4xf32>
    %c3 = arith.constant 3 : index
    %c0_5 = arith.constant 0 : index
    %10 = vector.load %arg13[%c3, %c0_5] : memref<19x96xf32, #tpu.memory_space<vmem>>, vector<16x96xf32>
    tpu.vector_store %arg13[%c3, %c0_5], %7 {strides = array<i32>} : memref<19x96xf32, #tpu.memory_space<vmem>>, vector<16x96xf32>,
    %c0_6 = arith.constant 0 : index
    %c0_7 = arith.constant 0 : index
    %11 = vector.load %arg4[%c0_6, %c0_7] : memref<4x96xf32, #tpu.memory_space<vmem>>, vector<4x96xf32>
    %cst_8 = arith.constant 0.000000e+00 : f32
    %12 = vector.broadcast %cst_8 : f32 to vector<16x96xf32>
    %c0_9 = arith.constant 0 : index
    %c0_10 = arith.constant 0 : index
    %13 = vector.load %arg5[%c0_9, %c0_10] : memref<1x96xf32, #tpu.memory_space<vmem>>, vector<1x96xf32>
    %14 = vector.broadcast %13 : vector<1x96xf32> to vector<16x96xf32>
    %15 = arith.addf %12, %14 : vector<16x96xf32>
    %c0_11 = arith.constant 0 : index
    %c0_12 = arith.constant 0 : index
    %16 = vector.load %arg13[%c0_11, %c0_12] : memref<19x96xf32, #tpu.memory_space<vmem>>, vector<16x96xf32>
    %17 = vector.extract_strided_slice %11 {offsets = [0, 0], sizes = [1, 96], strides = [1, 1]} : vector<4x96xf32> to vector<1x96xf32>
    %18 = vector.broadcast %17 : vector<1x96xf32> to vector<16x96xf32>
    %19 = arith.mulf %16, %18 : vector<16x96xf32>
    %20 = arith.addf %15, %19 : vector<16x96xf32>
    %c1 = arith.constant 1 : index
    %c0_13 = arith.constant 0 : index
    %21 = vector.load %arg13[%c1, %c0_13] : memref<19x96xf32, #tpu.memory_space<vmem>>, vector<16x96xf32>
    %22 = vector.extract_strided_slice %11 {offsets = [1, 0], sizes = [1, 96], strides = [1, 1]} : vector<4x96xf32> to vector<1x96xf32>
    %23 = vector.broadcast %22 : vector<1x96xf32> to vector<16x96xf32>
    %24 = arith.mulf %21, %23 : vector<16x96xf32>
    %25 = arith.addf %20, %24 : vector<16x96xf32>
    %c2 = arith.constant 2 : index
    %c0_14 = arith.constant 0 : index
    %26 = vector.load %arg13[%c2, %c0_14] : memref<19x96xf32, #tpu.memory_space<vmem>>, vector<16x96xf32>
    %27 = vector.extract_strided_slice %11 {offsets = [2, 0], sizes = [1, 96], strides = [1, 1]} : vector<4x96xf32> to vector<1x96xf32>
    %28 = vector.broadcast %27 : vector<1x96xf32> to vector<16x96xf32>
    %29 = arith.mulf %26, %28 : vector<16x96xf32>
    %30 = arith.addf %25, %29 : vector<16x96xf32>
    %c3_15 = arith.constant 3 : index
    %c0_16 = arith.constant 0 : index
    %31 = vector.load %arg13[%c3_15, %c0_16] : memref<19x96xf32, #tpu.memory_space<vmem>>, vector<16x96xf32>
    %32 = vector.extract_strided_slice %11 {offsets = [3, 0], sizes = [1, 96], strides = [1, 1]} : vector<4x96xf32> to vector<1x96xf32>
    %33 = vector.broadcast %32 : vector<1x96xf32> to vector<16x96xf32>
    %34 = arith.mulf %31, %33 : vector<16x96xf32>
    %35 = arith.addf %30, %34 : vector<16x96xf32>
    %c16 = arith.constant 16 : index
    %c0_17 = arith.constant 0 : index
    %36 = vector.load %arg13[%c16, %c0_17] : memref<19x96xf32, #tpu.memory_space<vmem>>, vector<3x96xf32>
    %c0_18 = arith.constant 0 : index
    %c0_19 = arith.constant 0 : index
    %37 = vector.load %arg13[%c0_18, %c0_19] : memref<19x96xf32, #tpu.memory_space<vmem>>, vector<3x96xf32>
    tpu.vector_store %arg13[%c0_18, %c0_19], %36 {strides = array<i32>} : memref<19x96xf32, #tpu.memory_space<vmem>>, vector<3x96xf32>,
    %cst_20 = arith.constant 0.000000e+00 : f32
    %38 = vector.broadcast %cst_20 : f32 to vector<16x96xf32>
    %39 = arith.subf %38, %35 : vector<16x96xf32>
    %40 = math.exp %39 : vector<16x96xf32>
    %cst_21 = arith.constant 1.000000e+00 : f32
    %41 = vector.broadcast %cst_21 : f32 to vector<16x96xf32>
    %42 = arith.addf %41, %40 : vector<16x96xf32>
    %cst_22 = arith.constant 1.000000e+00 : f32
    %43 = vector.broadcast %cst_22 : f32 to vector<16x96xf32>
    %44 = arith.divf %43, %42 : vector<16x96xf32>
    %45 = arith.mulf %35, %44 : vector<16x96xf32>
    %46 = vector.extract_strided_slice %45 {offsets = [0, 0], sizes = [16, 64], strides = [1, 1]} : vector<16x96xf32> to vector<16x64xf32>
    %47 = vector.extract_strided_slice %45 {offsets = [0, 64], sizes = [16, 16], strides = [1, 1]} : vector<16x96xf32> to vector<16x16xf32>
    %48 = vector.extract_strided_slice %45 {offsets = [0, 80], sizes = [16, 16], strides = [1, 1]} : vector<16x96xf32> to vector<16x16xf32>
    %c0_23 = arith.constant 0 : index
    %c0_24 = arith.constant 0 : index
    %49 = vector.load %arg6[%c0_23, %c0_24] : memref<1x4xf32, #tpu.memory_space<vmem>>, vector<1x4xf32>
    %50 = vector.broadcast %49 : vector<1x4xf32> to vector<16x4xf32>
    %51 = arith.addf %9, %50 : vector<16x4xf32>
    %cst_25 = arith.constant 0.000000e+00 : f32
    %52 = vector.broadcast %cst_25 : f32 to vector<16x4xf32>
    %53 = arith.maximumf %51, %52 : vector<16x4xf32>
    %54 = math.absf %51 : vector<16x4xf32>
    %cst_26 = arith.constant 0.000000e+00 : f32
    %55 = vector.broadcast %cst_26 : f32 to vector<16x4xf32>
    %56 = arith.subf %55, %54 : vector<16x4xf32>
    %57 = math.exp %56 : vector<16x4xf32>
    %cst_27 = arith.constant 1.000000e+00 : f32
    %58 = vector.broadcast %cst_27 : f32 to vector<16x4xf32>
    %59 = arith.addf %58, %57 : vector<16x4xf32>
    %60 = math.log %59 : vector<16x4xf32>
    %61 = arith.addf %53, %60 : vector<16x4xf32>
    %c0_28 = arith.constant 0 : index
    %c0_29 = arith.constant 0 : index
    %62 = vector.load %arg7[%c0_28, %c0_29] : memref<1x4xf32, #tpu.memory_space<vmem>>, vector<1x4xf32>
    %63 = math.exp %62 : vector<1x4xf32>
    %cst_30 = arith.constant 0.000000e+00 : f32
    %64 = vector.broadcast %cst_30 : f32 to vector<1x4xf32>
    %65 = arith.subf %64, %63 : vector<1x4xf32>
    %66 = vector.broadcast %65 : vector<1x4xf32> to vector<16x4xf32>
    %67 = arith.mulf %61, %66 : vector<16x4xf32>
    %68 = tpu.iota {dimensions = array<i32: 0>} : vector<16x16xi32>
    %69 = tpu.iota {dimensions = array<i32: 1>} : vector<16x16xi32>
    %70 = arith.cmpi sle, %69, %68 : vector<16x16xi32>
    %71 = arith.extui %70 : vector<16x16xi1> to vector<16x16xi32>
    %72 = arith.sitofp %71 : vector<16x16xi32> to vector<16x16xf32>
    %73 = arith.cmpi sle, %68, %69 : vector<16x16xi32>
    %74 = arith.extui %73 : vector<16x16xi1> to vector<16x16xi32>
    %75 = arith.sitofp %74 : vector<16x16xi32> to vector<16x16xf32>
    %cst_31 = arith.constant dense<0.000000e+00> : vector<16x4xf32>
    %76 = tpu.matmul %72, %67, %cst_31 {dimension_numbers = #tpu.dot_dimension_numbers<[1], [0], [0], [1], [0, 0, 1, 1], [], []>} : vector<16x16xf32>, vector<16x4xf32>, vector<16x4xf32> -> vector<16x4xf32>
    %cst_32 = arith.constant dense<0.000000e+00> : vector<4x16xf32>
    %77 = tpu.matmul %67, %75, %cst_32 {dimension_numbers = #tpu.dot_dimension_numbers<[0], [0], [1], [1], [0, 1, 1, 1], [], []>} : vector<16x4xf32>, vector<16x16xf32>, vector<4x16xf32> -> vector<4x16xf32>
    %cst_33 = arith.constant dense<0.000000e+00> : vector<16x16xf32>
    %78 = tpu.matmul %48, %47, %cst_33 {dimension_numbers = #tpu.dot_dimension_numbers<[1], [1], [0], [0], [0, 0, 1, 0], [], []>} : vector<16x16xf32>, vector<16x16xf32>, vector<16x16xf32> -> vector<16x16xf32>
    %c0_34 = arith.constant 0 : index
    %c0_35 = arith.constant 0 : index
    %79 = vector.load %arg12[%c0_34, %c0_35] : memref<16x64xf32, #tpu.memory_space<vmem>>, vector<16x64xf32>
    %80 = vector.extract_strided_slice %61 {offsets = [0, 0], sizes = [16, 1], strides = [1, 1]} : vector<16x4xf32> to vector<16x1xf32>
    %81 = vector.extract_strided_slice %46 {offsets = [0, 0], sizes = [16, 16], strides = [1, 1]} : vector<16x64xf32> to vector<16x16xf32>
    %82 = vector.broadcast %80 : vector<16x1xf32> to vector<16x16xf32>
    %83 = arith.mulf %82, %81 : vector<16x16xf32>
    %84 = vector.extract_strided_slice %76 {offsets = [0, 0], sizes = [16, 1], strides = [1, 1]} : vector<16x4xf32> to vector<16x1xf32>
    %85 = vector.extract_strided_slice %77 {offsets = [0, 0], sizes = [1, 16], strides = [1, 1]} : vector<4x16xf32> to vector<1x16xf32>
    %86 = vector.broadcast %84 : vector<16x1xf32> to vector<16x16xf32>
    %87 = vector.broadcast %85 : vector<1x16xf32> to vector<16x16xf32>
    %88 = arith.subf %86, %87 : vector<16x16xf32>
    %cst_36 = arith.constant -1.000000e+30 : f32
    %89 = vector.broadcast %cst_36 : f32 to vector<16x16xf32>
    %90 = arith.select %70, %88, %89 : vector<16x16xi1>, vector<16x16xf32>
    %91 = math.exp %90 : vector<16x16xf32>
    %92 = vector.extract_strided_slice %79 {offsets = [0, 0], sizes = [16, 16], strides = [1, 1]} : vector<16x64xf32> to vector<16x16xf32>
    %93 = arith.mulf %78, %91 : vector<16x16xf32>
    %cst_37 = arith.constant dense<0.000000e+00> : vector<16x16xf32>
    %94 = tpu.matmul %93, %83, %cst_37 {dimension_numbers = #tpu.dot_dimension_numbers<[1], [0], [0], [1], [0, 0, 1, 1], [], []>} : vector<16x16xf32>, vector<16x16xf32>, vector<16x16xf32> -> vector<16x16xf32>
    %95 = math.exp %84 : vector<16x1xf32>
    %cst_38 = arith.constant dense<0.000000e+00> : vector<16x16xf32>
    %96 = tpu.matmul %48, %92, %cst_38 {dimension_numbers = #tpu.dot_dimension_numbers<[1], [0], [0], [1], [0, 0, 1, 1], [], []>} : vector<16x16xf32>, vector<16x16xf32>, vector<16x16xf32> -> vector<16x16xf32>
    %97 = vector.broadcast %95 : vector<16x1xf32> to vector<16x16xf32>
    %98 = arith.mulf %97, %96 : vector<16x16xf32>
    %99 = arith.addf %94, %98 : vector<16x16xf32>
    %100 = vector.extract_strided_slice %84 {offsets = [15, 0], sizes = [1, 1], strides = [1, 1]} : vector<16x1xf32> to vector<1x1xf32>
    %101 = vector.broadcast %100 : vector<1x1xf32> to vector<16x1xf32>
    %102 = arith.subf %101, %84 : vector<16x1xf32>
    %103 = math.exp %102 : vector<16x1xf32>
    %104 = math.exp %100 : vector<1x1xf32>
    %105 = vector.broadcast %104 : vector<1x1xf32> to vector<16x16xf32>
    %106 = arith.mulf %105, %92 : vector<16x16xf32>
    %107 = vector.broadcast %103 : vector<16x1xf32> to vector<16x16xf32>
    %108 = arith.mulf %83, %107 : vector<16x16xf32>
    %cst_39 = arith.constant dense<0.000000e+00> : vector<16x16xf32>
    %109 = tpu.matmul %47, %108, %cst_39 {dimension_numbers = #tpu.dot_dimension_numbers<[0], [0], [1], [1], [0, 1, 1, 1], [], []>} : vector<16x16xf32>, vector<16x16xf32>, vector<16x16xf32> -> vector<16x16xf32>
    %110 = arith.addf %106, %109 : vector<16x16xf32>
    %111 = vector.extract_strided_slice %61 {offsets = [0, 1], sizes = [16, 1], strides = [1, 1]} : vector<16x4xf32> to vector<16x1xf32>
    %112 = vector.extract_strided_slice %46 {offsets = [0, 16], sizes = [16, 16], strides = [1, 1]} : vector<16x64xf32> to vector<16x16xf32>
    %113 = vector.broadcast %111 : vector<16x1xf32> to vector<16x16xf32>
    %114 = arith.mulf %113, %112 : vector<16x16xf32>
    %115 = vector.extract_strided_slice %76 {offsets = [0, 1], sizes = [16, 1], strides = [1, 1]} : vector<16x4xf32> to vector<16x1xf32>
    %116 = vector.extract_strided_slice %77 {offsets = [1, 0], sizes = [1, 16], strides = [1, 1]} : vector<4x16xf32> to vector<1x16xf32>
    %117 = vector.broadcast %115 : vector<16x1xf32> to vector<16x16xf32>
    %118 = vector.broadcast %116 : vector<1x16xf32> to vector<16x16xf32>
    %119 = arith.subf %117, %118 : vector<16x16xf32>
    %cst_40 = arith.constant -1.000000e+30 : f32
    %120 = vector.broadcast %cst_40 : f32 to vector<16x16xf32>
    %121 = arith.select %70, %119, %120 : vector<16x16xi1>, vector<16x16xf32>
    %122 = math.exp %121 : vector<16x16xf32>
    %123 = vector.extract_strided_slice %79 {offsets = [0, 16], sizes = [16, 16], strides = [1, 1]} : vector<16x64xf32> to vector<16x16xf32>
    %124 = arith.mulf %78, %122 : vector<16x16xf32>
    %cst_41 = arith.constant dense<0.000000e+00> : vector<16x16xf32>
    %125 = tpu.matmul %124, %114, %cst_41 {dimension_numbers = #tpu.dot_dimension_numbers<[1], [0], [0], [1], [0, 0, 1, 1], [], []>} : vector<16x16xf32>, vector<16x16xf32>, vector<16x16xf32> -> vector<16x16xf32>
    %126 = math.exp %115 : vector<16x1xf32>
    %cst_42 = arith.constant dense<0.000000e+00> : vector<16x16xf32>
    %127 = tpu.matmul %48, %123, %cst_42 {dimension_numbers = #tpu.dot_dimension_numbers<[1], [0], [0], [1], [0, 0, 1, 1], [], []>} : vector<16x16xf32>, vector<16x16xf32>, vector<16x16xf32> -> vector<16x16xf32>
    %128 = vector.broadcast %126 : vector<16x1xf32> to vector<16x16xf32>
    %129 = arith.mulf %128, %127 : vector<16x16xf32>
    %130 = arith.addf %125, %129 : vector<16x16xf32>
    %131 = vector.extract_strided_slice %115 {offsets = [15, 0], sizes = [1, 1], strides = [1, 1]} : vector<16x1xf32> to vector<1x1xf32>
    %132 = vector.broadcast %131 : vector<1x1xf32> to vector<16x1xf32>
    %133 = arith.subf %132, %115 : vector<16x1xf32>
    %134 = math.exp %133 : vector<16x1xf32>
    %135 = math.exp %131 : vector<1x1xf32>
    %136 = vector.broadcast %135 : vector<1x1xf32> to vector<16x16xf32>
    %137 = arith.mulf %136, %123 : vector<16x16xf32>
    %138 = vector.broadcast %134 : vector<16x1xf32> to vector<16x16xf32>
    %139 = arith.mulf %114, %138 : vector<16x16xf32>
    %cst_43 = arith.constant dense<0.000000e+00> : vector<16x16xf32>
    %140 = tpu.matmul %47, %139, %cst_43 {dimension_numbers = #tpu.dot_dimension_numbers<[0], [0], [1], [1], [0, 1, 1, 1], [], []>} : vector<16x16xf32>, vector<16x16xf32>, vector<16x16xf32> -> vector<16x16xf32>
    %141 = arith.addf %137, %140 : vector<16x16xf32>
    %142 = vector.extract_strided_slice %61 {offsets = [0, 2], sizes = [16, 1], strides = [1, 1]} : vector<16x4xf32> to vector<16x1xf32>
    %143 = vector.extract_strided_slice %46 {offsets = [0, 32], sizes = [16, 16], strides = [1, 1]} : vector<16x64xf32> to vector<16x16xf32>
    %144 = vector.broadcast %142 : vector<16x1xf32> to vector<16x16xf32>
    %145 = arith.mulf %144, %143 : vector<16x16xf32>
    %146 = vector.extract_strided_slice %76 {offsets = [0, 2], sizes = [16, 1], strides = [1, 1]} : vector<16x4xf32> to vector<16x1xf32>
    %147 = vector.extract_strided_slice %77 {offsets = [2, 0], sizes = [1, 16], strides = [1, 1]} : vector<4x16xf32> to vector<1x16xf32>
    %148 = vector.broadcast %146 : vector<16x1xf32> to vector<16x16xf32>
    %149 = vector.broadcast %147 : vector<1x16xf32> to vector<16x16xf32>
    %150 = arith.subf %148, %149 : vector<16x16xf32>
    %cst_44 = arith.constant -1.000000e+30 : f32
    %151 = vector.broadcast %cst_44 : f32 to vector<16x16xf32>
    %152 = arith.select %70, %150, %151 : vector<16x16xi1>, vector<16x16xf32>
    %153 = math.exp %152 : vector<16x16xf32>
    %154 = vector.extract_strided_slice %79 {offsets = [0, 32], sizes = [16, 16], strides = [1, 1]} : vector<16x64xf32> to vector<16x16xf32>
    %155 = arith.mulf %78, %153 : vector<16x16xf32>
    %cst_45 = arith.constant dense<0.000000e+00> : vector<16x16xf32>
    %156 = tpu.matmul %155, %145, %cst_45 {dimension_numbers = #tpu.dot_dimension_numbers<[1], [0], [0], [1], [0, 0, 1, 1], [], []>} : vector<16x16xf32>, vector<16x16xf32>, vector<16x16xf32> -> vector<16x16xf32>
    %157 = math.exp %146 : vector<16x1xf32>
    %cst_46 = arith.constant dense<0.000000e+00> : vector<16x16xf32>
    %158 = tpu.matmul %48, %154, %cst_46 {dimension_numbers = #tpu.dot_dimension_numbers<[1], [0], [0], [1], [0, 0, 1, 1], [], []>} : vector<16x16xf32>, vector<16x16xf32>, vector<16x16xf32> -> vector<16x16xf32>
    %159 = vector.broadcast %157 : vector<16x1xf32> to vector<16x16xf32>
    %160 = arith.mulf %159, %158 : vector<16x16xf32>
    %161 = arith.addf %156, %160 : vector<16x16xf32>
    %162 = vector.extract_strided_slice %146 {offsets = [15, 0], sizes = [1, 1], strides = [1, 1]} : vector<16x1xf32> to vector<1x1xf32>
    %163 = vector.broadcast %162 : vector<1x1xf32> to vector<16x1xf32>
    %164 = arith.subf %163, %146 : vector<16x1xf32>
    %165 = math.exp %164 : vector<16x1xf32>
    %166 = math.exp %162 : vector<1x1xf32>
    %167 = vector.broadcast %166 : vector<1x1xf32> to vector<16x16xf32>
    %168 = arith.mulf %167, %154 : vector<16x16xf32>
    %169 = vector.broadcast %165 : vector<16x1xf32> to vector<16x16xf32>
    %170 = arith.mulf %145, %169 : vector<16x16xf32>
    %cst_47 = arith.constant dense<0.000000e+00> : vector<16x16xf32>
    %171 = tpu.matmul %47, %170, %cst_47 {dimension_numbers = #tpu.dot_dimension_numbers<[0], [0], [1], [1], [0, 1, 1, 1], [], []>} : vector<16x16xf32>, vector<16x16xf32>, vector<16x16xf32> -> vector<16x16xf32>
    %172 = arith.addf %168, %171 : vector<16x16xf32>
    %173 = vector.extract_strided_slice %61 {offsets = [0, 3], sizes = [16, 1], strides = [1, 1]} : vector<16x4xf32> to vector<16x1xf32>
    %174 = vector.extract_strided_slice %46 {offsets = [0, 48], sizes = [16, 16], strides = [1, 1]} : vector<16x64xf32> to vector<16x16xf32>
    %175 = vector.broadcast %173 : vector<16x1xf32> to vector<16x16xf32>
    %176 = arith.mulf %175, %174 : vector<16x16xf32>
    %177 = vector.extract_strided_slice %76 {offsets = [0, 3], sizes = [16, 1], strides = [1, 1]} : vector<16x4xf32> to vector<16x1xf32>
    %178 = vector.extract_strided_slice %77 {offsets = [3, 0], sizes = [1, 16], strides = [1, 1]} : vector<4x16xf32> to vector<1x16xf32>
    %179 = vector.broadcast %177 : vector<16x1xf32> to vector<16x16xf32>
    %180 = vector.broadcast %178 : vector<1x16xf32> to vector<16x16xf32>
    %181 = arith.subf %179, %180 : vector<16x16xf32>
    %cst_48 = arith.constant -1.000000e+30 : f32
    %182 = vector.broadcast %cst_48 : f32 to vector<16x16xf32>
    %183 = arith.select %70, %181, %182 : vector<16x16xi1>, vector<16x16xf32>
    %184 = math.exp %183 : vector<16x16xf32>
    %185 = vector.extract_strided_slice %79 {offsets = [0, 48], sizes = [16, 16], strides = [1, 1]} : vector<16x64xf32> to vector<16x16xf32>
    %186 = arith.mulf %78, %184 : vector<16x16xf32>
    %cst_49 = arith.constant dense<0.000000e+00> : vector<16x16xf32>
    %187 = tpu.matmul %186, %176, %cst_49 {dimension_numbers = #tpu.dot_dimension_numbers<[1], [0], [0], [1], [0, 0, 1, 1], [], []>} : vector<16x16xf32>, vector<16x16xf32>, vector<16x16xf32> -> vector<16x16xf32>
    %188 = math.exp %177 : vector<16x1xf32>
    %cst_50 = arith.constant dense<0.000000e+00> : vector<16x16xf32>
    %189 = tpu.matmul %48, %185, %cst_50 {dimension_numbers = #tpu.dot_dimension_numbers<[1], [0], [0], [1], [0, 0, 1, 1], [], []>} : vector<16x16xf32>, vector<16x16xf32>, vector<16x16xf32> -> vector<16x16xf32>
    %190 = vector.broadcast %188 : vector<16x1xf32> to vector<16x16xf32>
    %191 = arith.mulf %190, %189 : vector<16x16xf32>
    %192 = arith.addf %187, %191 : vector<16x16xf32>
    %193 = vector.extract_strided_slice %177 {offsets = [15, 0], sizes = [1, 1], strides = [1, 1]} : vector<16x1xf32> to vector<1x1xf32>
    %194 = vector.broadcast %193 : vector<1x1xf32> to vector<16x1xf32>
    %195 = arith.subf %194, %177 : vector<16x1xf32>
    %196 = math.exp %195 : vector<16x1xf32>
    %197 = math.exp %193 : vector<1x1xf32>
    %198 = vector.broadcast %197 : vector<1x1xf32> to vector<16x16xf32>
    %199 = arith.mulf %198, %185 : vector<16x16xf32>
    %200 = vector.broadcast %196 : vector<16x1xf32> to vector<16x16xf32>
    %201 = arith.mulf %176, %200 : vector<16x16xf32>
    %cst_51 = arith.constant dense<0.000000e+00> : vector<16x16xf32>
    %202 = tpu.matmul %47, %201, %cst_51 {dimension_numbers = #tpu.dot_dimension_numbers<[0], [0], [1], [1], [0, 1, 1, 1], [], []>} : vector<16x16xf32>, vector<16x16xf32>, vector<16x16xf32> -> vector<16x16xf32>
    %203 = arith.addf %199, %202 : vector<16x16xf32>
    %204 = tpu.concatenate %99, %130, %161, %192 in 1 : vector<16x16xf32>, vector<16x16xf32>, vector<16x16xf32>, vector<16x16xf32> -> vector<16x64xf32>
    %205 = tpu.concatenate %110, %141, %172, %203 in 1 : vector<16x16xf32>, vector<16x16xf32>, vector<16x16xf32>, vector<16x16xf32> -> vector<16x64xf32>
    %c0_52 = arith.constant 0 : index
    %c0_53 = arith.constant 0 : index
    %206 = vector.load %arg12[%c0_52, %c0_53] : memref<16x64xf32, #tpu.memory_space<vmem>>, vector<16x64xf32>
    tpu.vector_store %arg12[%c0_52, %c0_53], %205 {strides = array<i32>} : memref<16x64xf32, #tpu.memory_space<vmem>>, vector<16x64xf32>,
    %c0_54 = arith.constant 0 : index
    %c0_55 = arith.constant 0 : index
    %207 = vector.load %arg8[%c0_54, %c0_55] : memref<1x64xf32, #tpu.memory_space<vmem>>, vector<1x64xf32>
    %208 = vector.broadcast %207 : vector<1x64xf32> to vector<16x64xf32>
    %209 = arith.mulf %208, %46 : vector<16x64xf32>
    %210 = arith.addf %204, %209 : vector<16x64xf32>
    %cst_56 = arith.constant 0.000000e+00 : f32
    %211 = vector.broadcast %cst_56 : f32 to vector<16x64xf32>
    %212 = arith.subf %211, %8 : vector<16x64xf32>
    %213 = math.exp %212 : vector<16x64xf32>
    %cst_57 = arith.constant 1.000000e+00 : f32
    %214 = vector.broadcast %cst_57 : f32 to vector<16x64xf32>
    %215 = arith.addf %214, %213 : vector<16x64xf32>
    %cst_58 = arith.constant 1.000000e+00 : f32
    %216 = vector.broadcast %cst_58 : f32 to vector<16x64xf32>
    %217 = arith.divf %216, %215 : vector<16x64xf32>
    %218 = arith.mulf %8, %217 : vector<16x64xf32>
    %219 = arith.mulf %210, %218 : vector<16x64xf32>
    %220 = arith.mulf %219, %219 : vector<16x64xf32>
    %cst_59 = arith.constant dense<0.000000e+00> : vector<16xf32>
    %221 = vector.multi_reduction <add>, %220, %cst_59 [1] : vector<16x64xf32> to vector<16xf32>
    %222 = vector.shape_cast %221 : vector<16xf32> to vector<16x1xf32>
    %cst_60 = arith.constant 6.400000e+01 : f32
    %223 = vector.broadcast %cst_60 : f32 to vector<16x1xf32>
    %224 = arith.divf %222, %223 : vector<16x1xf32>
    %cst_61 = arith.constant 9.99999997E-7 : f32
    %225 = vector.broadcast %cst_61 : f32 to vector<16x1xf32>
    %226 = arith.addf %224, %225 : vector<16x1xf32>
    %227 = math.rsqrt %226 : vector<16x1xf32>
    %228 = vector.broadcast %227 : vector<16x1xf32> to vector<16x64xf32>
    %229 = arith.mulf %219, %228 : vector<16x64xf32>
    %c0_62 = arith.constant 0 : index
    %c0_63 = arith.constant 0 : index
    %230 = vector.load %arg9[%c0_62, %c0_63] : memref<1x64xf32, #tpu.memory_space<vmem>>, vector<1x64xf32>
    %231 = vector.broadcast %230 : vector<1x64xf32> to vector<16x64xf32>
    %232 = arith.mulf %229, %231 : vector<16x64xf32>
    %c0_64 = arith.constant 0 : index
    %c0_65 = arith.constant 0 : index
    %233 = vector.load %arg10[%c0_64, %c0_65] : memref<64x32xf32, #tpu.memory_space<vmem>>, vector<64x32xf32>
    %cst_66 = arith.constant dense<0.000000e+00> : vector<16x32xf32>
    %234 = tpu.matmul %232, %233, %cst_66 {dimension_numbers = #tpu.dot_dimension_numbers<[1], [0], [0], [1], [0, 0, 1, 1], [], []>} : vector<16x64xf32>, vector<64x32xf32>, vector<16x32xf32> -> vector<16x32xf32>
    %c0_67 = arith.constant 0 : index
    %c0_68 = arith.constant 0 : index
    %c0_69 = arith.constant 0 : index
    %235 = vector.load %arg11[%c0_67, %c0_68, %c0_69] : memref<1x16x32xf32, #tpu.memory_space<vmem>>, vector<1x16x32xf32>
    %236 = vector.shape_cast %235 : vector<1x16x32xf32> to vector<16x32xf32>
    %237 = vector.shape_cast %234 : vector<16x32xf32> to vector<1x16x32xf32>
    tpu.vector_store %arg11[%c0_67, %c0_68, %c0_69], %237 {strides = array<i32>} : memref<1x16x32xf32, #tpu.memory_space<vmem>>, vector<1x16x32xf32>,
    return
  }
  func.func @transform_0(%arg0: i32, %arg1: i32) -> (i32, i32, i32) {
    %c0_i32 = arith.constant 0 : i32
    %c0_i32_0 = arith.constant 0 : i32
    return %arg0, %arg1, %c0_i32 : i32, i32, i32
  }
  func.func @transform_1(%arg0: i32, %arg1: i32) -> (i32, i32) {
    %c0_i32 = arith.constant 0 : i32
    %c0_i32_0 = arith.constant 0 : i32
    %c0_i32_1 = arith.constant 0 : i32
    return %c0_i32, %c0_i32_0 : i32, i32
  }
  func.func @transform_2(%arg0: i32, %arg1: i32) -> (i32, i32) {
    %c0_i32 = arith.constant 0 : i32
    %c0_i32_0 = arith.constant 0 : i32
    %c0_i32_1 = arith.constant 0 : i32
    return %c0_i32, %c0_i32_0 : i32, i32
  }
  func.func @transform_3(%arg0: i32, %arg1: i32) -> (i32, i32) {
    %c0_i32 = arith.constant 0 : i32
    %c0_i32_0 = arith.constant 0 : i32
    %c0_i32_1 = arith.constant 0 : i32
    return %c0_i32, %c0_i32_0 : i32, i32
  }
  func.func @transform_4(%arg0: i32, %arg1: i32) -> (i32, i32) {
    %c0_i32 = arith.constant 0 : i32
    %c0_i32_0 = arith.constant 0 : i32
    %c0_i32_1 = arith.constant 0 : i32
    return %c0_i32, %c0_i32_0 : i32, i32
  }
  func.func @transform_5(%arg0: i32, %arg1: i32) -> (i32, i32) {
    %c0_i32 = arith.constant 0 : i32
    %c0_i32_0 = arith.constant 0 : i32
    %c0_i32_1 = arith.constant 0 : i32
    return %c0_i32, %c0_i32_0 : i32, i32
  }
  func.func @transform_6(%arg0: i32, %arg1: i32) -> (i32, i32) {
    %c0_i32 = arith.constant 0 : i32
    %c0_i32_0 = arith.constant 0 : i32
    %c0_i32_1 = arith.constant 0 : i32
    return %c0_i32, %c0_i32_0 : i32, i32
  }
  func.func @transform_7(%arg0: i32, %arg1: i32) -> (i32, i32) {
    %c0_i32 = arith.constant 0 : i32
    %c0_i32_0 = arith.constant 0 : i32
    %c0_i32_1 = arith.constant 0 : i32
    return %c0_i32, %c0_i32_0 : i32, i32
  }
  func.func @transform_8(%arg0: i32, %arg1: i32) -> (i32, i32) {
    %c0_i32 = arith.constant 0 : i32
    %c0_i32_0 = arith.constant 0 : i32
    %c0_i32_1 = arith.constant 0 : i32
    return %c0_i32, %c0_i32_0 : i32, i32
  }
  func.func @transform_9(%arg0: i32, %arg1: i32) -> (i32, i32, i32) {
    %c0_i32 = arith.constant 0 : i32
    %c0_i32_0 = arith.constant 0 : i32
    return %arg0, %arg1, %c0_i32 : i32, i32, i32
  }
}

</mosaic_0001>

<bundles_post_ra>
// kernel: memory_efficient_mamba.1
= control target key start
LH: loop header
LB: loop body
LE: loop exit
PB: predicated region body
PF: predicated region fallthrough
CT: control target
= control target key end

     0   :  { %s2069_s30 = smov 0   ;;  %s2071_s10 = smov 0   ;;  %s2567_s0 = inlined_call_operand.vmem [shape: f32[2,16,32], index: 0, kind: input, shape index: {}]   ;;  %s2568_s1 = inlined_call_operand.vmem [shape: f32[32,256], index: 1, kind: input, shape index: {}]   ;;  %s2569_s2 = inlined_call_operand.vmem [shape: f32[4,96], index: 2, kind: input, shape index: {}]   ;;  %s2570_s3 = inlined_call_operand.vmem [shape: f32[1,96], index: 3, kind: input, shape index: {}]   ;;  %s2571_s4 = inlined_call_operand.vmem [shape: f32[1,4], index: 4, kind: input, shape index: {}]   ;;  %s2572_s5 = inlined_call_operand.vmem [shape: f32[1,4], index: 5, kind: input, shape index: {}]   ;;  %s2573_s6 = inlined_call_operand.vmem [shape: f32[1,64], index: 6, kind: input, shape index: {}]   ;;  %s2574_s7 = inlined_call_operand.vmem [shape: f32[1,64], index: 7, kind: input, shape index: {}]   ;;  %s2575_s8 = inlined_call_operand.vmem [shape: f32[64,32], index: 8, kind: input, shape index: {}]   ;;  %s2576_s9 = inlined_call_operand.vmem [shape: f32[2,16,32], index: 9, kind: output, shape index: {}]  }
   0x1   :  { %s2073_s11 = smov 0  }
   0x2 LB: > { %s31_s12 = sadd.s32 1, %s1992_s10  ;;  %p1722_p0 = scmp.ge.s32.totalorder %s1996_s11, 1  ;;  %s1996_s11 = sphi %s2073_s11, %s19_s11   ;;  %s1992_s10 = sphi %s2071_s10, %s2584_s10   ;;  %s1988_s30 = sphi %s2069_s30, %s2583_s30  }
   0x3   : > { %p33_p1 = scmp.ge.s32.totalorder %s31_s12, 2  ;;  %p308_p2 = scmp.lt.s32.totalorder %s1996_s11, 3 }
   0x5   : > { %s2586_s12 = smov (%p33_p1, %s31_s12), 0  ;;  %p309_p3 = pnand %p1722_p0, %p308_p2 }
   0x6   : > { %p353_p4 = scmp.lt.s32.totalorder (!%p309_p3), %s1988_s30, 1  ;;  %s1998_s20 = smov (!%p309_p3), 32  }
   0x7   : > { %312 = sbr.rel (%p309_p3) target bundleno = 1285 (0x505), region = 56  ;;  %s2001_s25 = smov (!%p309_p3), 96  }
   0x8   : > { %s2002_s26 = smov (!%p309_p3), 48   ;;  %s2003_s27 = smov (!%p309_p3), 64  }
   0x9   : > { %s2007_s28 = smov (!%p309_p3), 112   ;;  %s2013_s29 = smov (!%p309_p3), 80  }
   0xa   : > { %s2014_s13 = smov (!%p309_p3), 127   ;;  %s2015_s14 = smov (!%p309_p3), 126  }
   0xb   : > { %s2016_s15 = smov (!%p309_p3), 125   ;;  %s2017_s17 = smov (!%p309_p3), 16  }
   0xc   : > { %v392_v0 = vld [vmem:[%s2568_s1 + $0x30] sm:$0xff]  ;;  %v393_v1 = vld [vmem:[%s2568_s1 + $0x38] sm:$0xff]  ;;  %v390_v2 = vld [vmem:[%s2568_s1 + $0x20] sm:$0xff]  ;;  %s2588_s30 = smov (!%p353_p4, %s1988_s30), 1  ;;  %vm394_vm0 = vcmask 261120   ;;  %vm376_vm1 = vcmask 523264  }
   0xd   : > { %413 = vmatpush.msra.mxu0 %v392_v0  ;;  %436 = vmatpush.msra.mxu1 %v393_v1  ;;  %v391_v3 = vld [vmem:[%s2568_s1 + $0x28] sm:$0xff]  ;;  %v388_v4 = vld [vmem:[%s2568_s1 + $0x10] sm:$0xff]  ;;  %v389_v5 = vld [vmem:[%s2568_s1 + $0x18] sm:$0xff]  ;;  %s1772_s16 = sshll.u32 %s2588_s30, 4  ;;  %vm379_vm2 = vcmask 785408   ;;  %v1999_v16 = vmov 0.0  }
   0xe   : > { %v386_v6 = vld [vmem:[%s2568_s1] sm:$0xff]  ;;  %v387_v9 = vld [vmem:[%s2568_s1 + $0x8] sm:$0xff]  ;;  %s360_s19 = scalar_lea.vmem %s2567_s0, %s1772_s16  ;;  %377 = vst.msk [vmem:[#allocation2] sm:$0xff] %vm376_vm1, %v1999_v16  ;;  %vm382_vm3 = vcmask 780288   ;;  %v2000_v60 = vmov 33   ;;  %vm589_vm14 = vcmask 130048  }
   0xf   : > { %414 = vmatpush.msra.mxu0 %v390_v2  ;;  %437 = vmatpush.msra.mxu1 %v391_v3  ;;  %v1904_v7 = vld [vmem:[%s2571_s4] ss:$0 sm:$0xff]  ;;  %v385_v13 = vld [vmem:[%s360_s19 + $0x8] sm:$0xff]  ;;  %378 = vst.msk [vmem:[#allocation2 + $0x8] sm:$0xff] %vm376_vm1, %v1999_v16 }
  0x10   : > { %v553_v8 = vld [vmem:[%s2572_s5] sm:$0x1]  ;;  %530 = vrot.lane.b32.xlu0 %v1904_v7, %s1998_s20  ;;  %380 = vst.msk [vmem:[#allocation3] sm:$0xff] %vm379_vm2, %v1999_v16  ;;  %1830 = vset.pattern.permute.xlu1 %v2000_v60 }
  0x11   : > { %v554_v10 = vmul.f32 1.442695, %v553_v8  ;;  %415 = vmatpush.msra.mxu0 %v388_v4  ;;  %438 = vmatpush.msra.mxu1 %v389_v5  ;;  %v384_v11 = vld [vmem:[%s360_s19] sm:$0xff]  ;;  %381 = vst.msk [vmem:[#allocation3 + $0x8] sm:$0xff] %vm379_vm2, %v1999_v16 }
  0x12   : > { %383 = vst.msk [vmem:[#allocation3 + $0x10] sm:$0x7] %vm382_vm3, %v1999_v16  ;;  %v450_v20 = vld [vmem:[%s2569_s2] sm:$0xf]  ;;  %1829 = vset.pattern.permute.xlu0 %v2000_v60 }
  0x13   : > { %1908 = vpow2.f32 %v554_v10  ;;  %416 = vmatpush.msra.mxu0 %v386_v6  ;;  %439 = vmatpush.msra.mxu1 %v387_v9  ;;  %v458_v22 = vperm.slane %v450_v20, 0  ;;  %v465_v23 = vperm.slane %v450_v20, 1  ;;  %v1905_v24 = vld [vmem:[%s2570_s3] ss:$0 sm:$0xff]  ;;  %v472_v32 = vperm.slane %v450_v20, 2 }
  0x14   : > { %1727 = vmatmul.msk.f32.vlgmr.msra.gmra.mxu0 %vm394_vm0, %v384_v11  ;;  %1729 = vmatmul.msk.f32.vlgmr.msra.gmra.mxu1 %vm394_vm0, %v384_v11  ;;  %v479_v37 = vperm.slane %v450_v20, 3 }
  0x19   : > { %v1909_v12 = vpop.eup %1908 }
  0x1a   : > { %v556_v14 = vsub.f32 0.0, %v1909_v12 }
  0x1c   : > { %v558_v15 = vperm.slane %v556_v14, 0  ;;  %1728 = vmatmul.msk.f32.gmra.mxu0 %vm394_vm0, %v385_v13  ;;  %1730 = vmatmul.msk.f32.gmra.mxu1 %vm394_vm0, %v385_v13 }
  0x1e   : > { %559 = vrot.lane.b32.xlu0 %v558_v15, %s1998_s20 }
  0x82   : > { %v531_v19 = vpop.permute.xlu0 %530 }
  0x90   : > { %v560_v13 = vpop.permute.xlu0 %559 }
  0x91   : > { %v2141_v17 = vpop.f32.mrf.mxu0  ;;  %v2143_v18 = vpop.f32.mrf.mxu1 }
  0x92   : > { %448 = vst.msk [vmem:[#allocation3 + $0x3] sm:$0xff] %vm379_vm2, %v2141_v17  ;;  %v2151_v21 = vadd.f32 %v531_v19, %v2143_v18 }
  0x94   : > { %v537_v25 = vand.u32 2147483647, %v2151_v21 }
  0x96   : > { %v539_v36 = vsub.f32 0.0, %v537_v25 }
  0x98   : > { %v541_v42 = vmul.f32 1.442695, %v539_v36 }
  0x99   : > { %v2157_v26 = vpop.f32.mrf.mxu0  ;;  %v456_v27 = vld [vmem:[#allocation3] sm:$0xff]  ;;  %v2159_v29 = vpop.f32.mrf.mxu1 }
  0x9a   : > { %v463_v28 = vld [vmem:[#allocation3 + $0x1] sm:$0xff]  ;;  %449 = vst.msk [vmem:[#allocation3 + $0xb] sm:$0xff] %vm379_vm2, %v2157_v26  ;;  %v459_v30 = vmul.f32 %v458_v22, %v456_v27  ;;  %v534_v33 = vadd.f32 %v531_v19, %v2159_v29  ;;  %1910 = vpow2.f32 %v541_v42 }
  0x9b   : > { %v466_v31 = vmul.f32 %v465_v23, %v463_v28  ;;  %v470_v35 = vld [vmem:[#allocation3 + $0x2] sm:$0xff] }
  0x9c   : > { %v461_v34 = vadd.f32 %v1905_v24, %v459_v30  ;;  %v477_v38 = vld [vmem:[#allocation3 + $0x3] sm:$0xff]  ;;  %v473_v40 = vmul.f32 %v472_v32, %v470_v35  ;;  %v538_v41 = vand.u32 2147483647, %v534_v33  ;;  %v536_v9 = vmax.f32 %v534_v33, 0.0 }
  0x9d   : > { %v480_v45 = vmul.f32 %v479_v37, %v477_v38 }
  0x9e   : > { %v468_v39 = vadd.f32 %v466_v31, %v461_v34  ;;  %v540_v49 = vsub.f32 0.0, %v538_v41 }
  0xa0   : > { %v475_v50 = vadd.f32 %v473_v40, %v468_v39  ;;  %v543_v53 = vmul.f32 1.442695, %v540_v49  ;;  %v1911_v63 = vpop.eup %1910  ;;  %v2005_v49 = vmov 34  }
  0xa1   : > { %v457_v43 = vld [vmem:[#allocation3 + $0x8] sm:$0xff]  ;;  %v484_v48 = vld [vmem:[#allocation3 + $0x10] sm:$0x7]  ;;  %v545_v1 = vadd.f32 1.0, %v1911_v63 }
  0xa2   : > { %v464_v44 = vld [vmem:[#allocation3 + $0x9] sm:$0xff]  ;;  %v460_v46 = vmul.f32 %v458_v22, %v457_v43  ;;  %486 = vst.msk [vmem:[#allocation3] sm:$0x7] %vm382_vm3, %v484_v48  ;;  %v482_v54 = vadd.f32 %v480_v45, %v475_v50  ;;  %1912 = vpow2.f32 %v543_v53  ;;  %v2004_v48 = vmov 32  }
  0xa3   : > { %v467_v47 = vmul.f32 %v465_v23, %v464_v44  ;;  %v471_v51 = vld [vmem:[#allocation3 + $0xa] sm:$0xff]  ;;  %v535_v23 = vmax.f32 %v2151_v21, 0.0  ;;  %v2006_v50 = vmov 35  }
  0xa4   : > { %v462_v52 = vadd.f32 %v1905_v24, %v460_v46  ;;  %v474_v56 = vmul.f32 %v472_v32, %v471_v51  ;;  %v487_v57 = vsub.f32 0.0, %v482_v54  ;;  %v478_v58 = vld [vmem:[#allocation3 + $0xb] sm:$0xff] }
  0xa5   : > { %v481_v62 = vmul.f32 %v479_v37, %v478_v58  ;;  %v715_v51 = vld [vmem:[#allocation2] sm:$0xff] }
  0xa6   : > { %v469_v55 = vadd.f32 %v467_v47, %v462_v52  ;;  %v489_v59 = vmul.f32 1.442695, %v487_v57  ;;  %v716_v52 = vld [vmem:[#allocation2 + $0x8] sm:$0xff] }
  0xa7   : > { %v2185_v53 = vpack.i.bf16 %v715_v51, %v716_v52 }
  0xa8   : > { %v476_v61 = vadd.f32 %v474_v56, %v469_v55  ;;  %1914 = vpow2.f32 %v489_v59  ;;  %v1913_v0 = vpop.eup %1912 }
  0xa9   : > { %v546_v2 = vadd.f32 1.0, %v1913_v0 }
  0xaa   : > { %v483_v3 = vadd.f32 %v481_v62, %v476_v61 }
  0xab   : > { %1916 = vlog2.f32 %v546_v2 }
  0xac   : > { %1918 = vlog2.f32 %v545_v1  ;;  %v488_v5 = vsub.f32 0.0, %v483_v3  ;;  %v2008_v1 = vmov 1.0  }
  0xae   : > { %v1915_v4 = vpop.eup %1914  ;;  %v491_v7 = vmul.f32 1.442695, %v488_v5 }
  0xaf   : > { %v493_v6 = vadd.f32 1.0, %v1915_v4 }
  0xb1   : > { %1920 = vrcp.f32 %v493_v6  ;;  %v1917_v8 = vpop.eup %1916  ;;  %v506_v24 = vand.u32 2147483648, %v493_v6  ;;  %vm500_vm4 = vweird.f32 %v493_v6  ;;  %v504_v28 = vand.u32 2147483647, %v493_v6 }
  0xb2   : > { %1922 = vpow2.f32 %v491_v7  ;;  %v550_v10 = vmul.f32 0.6931472, %v1917_v8  ;;  %v1919_v11 = vpop.eup %1918 }
  0xb3   : > { %v548_v15 = vmul.f32 0.6931472, %v1919_v11  ;;  %v507_v32 = vor.u32 1.1754944e-38, %v506_v24  ;;  %vm505_vm7 = vcmp.eq.f32.partialorder %v504_v28, 8.507059e+37  ;;  %v2010_v24 = vmov 1  }
  0xb4   : > { %v552_v12 = vadd.f32 %v550_v10, %v536_v9 }
  0xb5   : > { %v2167_v30 = vadd.f32 %v548_v15, %v535_v23  ;;  %v2009_v23 = vmov 0  }
  0xb6   : > { %v563_v19 = vmul.f32 %v560_v13, %v552_v12 }
  0xb7   : > { %v1921_v14 = vpop.eup %1920  ;;  %v562_v34 = vmul.f32 %v560_v13, %v2167_v30 }
  0xb8   : > { %v1923_v20 = vpop.eup %1922  ;;  %v496_v22 = vmul.f32 %v1921_v14, %v493_v6  ;;  %585 = vrot.lane.b32.xlu1 %v563_v19, %s2001_s25  ;;  %vm501_vm5 = vweird.f32 %v1921_v14 }
  0xb9   : > { %v494_v25 = vadd.f32 1.0, %v1923_v20  ;;  %vm502_vm6 = vmor %vm500_vm4, %vm501_vm5 }
  0xba   : > { %v497_v27 = vsub.f32 1.0, %v496_v22 }
  0xbb   : > { %1924 = vrcp.f32 %v494_v25  ;;  %v521_v39 = vand.u32 2147483648, %v494_v25  ;;  %vm515_vm8 = vweird.f32 %v494_v25  ;;  %v519_v41 = vand.u32 2147483647, %v494_v25 }
  0xbc   : > { %v498_v31 = vmul.f32 %v1921_v14, %v497_v27 }
  0xbd   : > { %v522_v43 = vor.u32 1.1754944e-38, %v521_v39  ;;  %vm520_vm11 = vcmp.eq.f32.partialorder %v519_v41, 8.507059e+37 }
  0xbe   : > { %v499_v33 = vadd.f32 %v1921_v14, %v498_v31 }
  0xc0   : > { %v503_v21 = vsel %vm502_vm6, %v1921_v14, %v499_v33  ;;  %583 = vrot.lane.b32.xlu1 %v562_v34, %s2001_s25 }
  0xc1   : > { %v1925_v35 = vpop.eup %1924  ;;  %v508_v36 = vsel %vm505_vm7, %v507_v32, %v503_v21  ;;  %v2011_v21 = vmov 3  }
  0xc2   : > { %v2171_v37 = vmul.f32 %v508_v36, %v482_v54  ;;  %v511_v38 = vmul.f32 %v1925_v35, %v494_v25  ;;  %vm516_vm9 = vweird.f32 %v1925_v35  ;;  %v564_v54 = vlaneseq }
  0xc3   : > { %vm517_vm10 = vmor %vm515_vm8, %vm516_vm9  ;;  %v1447_v36 = vsub.f32 0.0, %v2141_v17 }
  0xc4   : > { %676 = vrot.lane.b32.xlu0 %v2171_v37, %s2002_s26  ;;  %v512_v40 = vsub.f32 1.0, %v511_v38  ;;  %680 = vrot.lane.b32.xlu2 %v2171_v37, %s2003_s27  ;;  %v565_v55 = vshrl.u32 %v564_v54, 7  ;;  %v568_v57 = vand.u32 127, %v564_v54 }
  0xc5   : > { %v1451_v41 = vmul.f32 1.442695, %v1447_v36 }
  0xc6   : > { %v513_v42 = vmul.f32 %v1925_v35, %v512_v40  ;;  %v566_v58 = vadd.s32 8, %v565_v55  ;;  %vm2191_vm12 = vcmp.le.s32.totalorder %v568_v57, %v565_v55  ;;  %vm575_vm2 = vcmp.le.s32.totalorder %v565_v55, %v568_v57 }
  0xc7   : > { %v1731_v62 = vsel %vm2191_vm12, 1.0, %v1999_v16 }
  0xc8   : > { %v514_v44 = vadd.f32 %v1925_v35, %v513_v42  ;;  %vm2195_vm13 = vcmp.le.s32.totalorder %v568_v57, %v566_v58  ;;  %vm576_vm15 = vcmp.le.s32.totalorder %v566_v58, %v568_v57 }
  0xc9   : > { %v1732_v0 = vsel %vm2195_vm13, 1.0, %v1999_v16  ;;  %1737 = vmatpush.msk.msra.mxu3 %vm576_vm15, %v2008_v1 }
  0xca   : > { %v518_v45 = vsel %vm517_vm10, %v1925_v35, %v514_v44 }
  0xcb   : > { %v523_v46 = vsel %vm520_vm11, %v522_v43, %v518_v45  ;;  %1738 = vmatpush.msk.msra.mxu3 %vm575_vm2, %v2008_v1  ;;  %v1448_v45 = vsub.f32 0.0, %v2143_v18 }
  0xcc   : > { %913 = vperm.xlu0 %1829, %v552_v12   ;;  %v2176_v47 = vmul.f32 %v523_v46, %v483_v3 }
  0xce   : > { %678 = vrot.lane.b32.xlu1 %v2176_v47, %s2002_s26  ;;  %682 = vrot.lane.b32.xlu2 %v2176_v47, %s2003_s27  ;;  %s2542_s27 = scalar_lea.vmem %s2576_s9, %s1772_s16 }
  0xd4   : > { %1834 = vset.pattern.permute.xlu0 %v2004_v48 }
  0xd5   : > { %724 = vperm.xlu0 %1834, %v552_v12  }
  0xd6   : > { %909 = vperm.xlu1 %1830, %v2167_v30  }
  0xdd   : > { %1842 = vrot.lane.b32.xlu0 %v2185_v53, %s2001_s25 }
  0xde   : > { %1831 = vset.pattern.permute.xlu1 %v2005_v49  ;;  %1856 = vset.pattern.permute.xlu0 %v2009_v23 }
  0xdf   : > { %1078 = vperm.xlu1 %1831, %v552_v12  }
  0xe7   : > { %1074 = vperm.xlu1 %1831, %v2167_v30  }
  0xef   : > { %1832 = vset.pattern.permute.xlu1 %v2006_v50 }
  0xf0   : > { %1241 = vperm.xlu1 %1832, %v552_v12  }
  0xf8   : > { %1835 = vset.pattern.permute.xlu1 %v2004_v48  ;;  %v1453_v48 = vmul.f32 1.442695, %v1448_v45 }
  0xf9   : > { %719 = vperm.xlu1 %1835, %v2167_v30  }
 0x101   : > { %1837 = vrot.lane.b32.xlu1 %v2185_v53, %s2007_s28 }
 0x102   : > { %1857 = vset.pattern.permute.xlu1 %v2010_v24 }
 0x11e   : > { %v2189_v59 = vpop.permute.xlu2 %680 }
 0x128   : > { %v2206_v2 = vpop.permute.xlu2 %682 }
 0x129   : > { %1740 = vmatpush.xpose.msk.msrb.mxu3 %vm589_vm14, %v2206_v2 }
 0x12a   : > { %v586_v56 = vpop.permute.xlu1 %585 }
 0x12b   : > { %610 = vmatpush.msrb.mxu0 %v586_v56  ;;  %1774 = vmatpush.msra.mxu2 %v586_v56 }
 0x12d   : > { %1741 = vmatpush.xpose.msk.msrb.mxu3 %vm589_vm14, %v2189_v59 }
 0x132   : > { %v584_v63 = vpop.permute.xlu1 %583 }
 0x133   : > { %611 = vmatpush.msrb.mxu0 %v584_v63  ;;  %1775 = vmatpush.msra.mxu2 %v584_v63 }
 0x134   : > { %619 = vxpose.xlu2.b32.start [1/2] (short) (narrow) %v584_v63, 8  ;;  %1735 = vmatmul.msk.f32.vlgmr.msrb.gmra.mxu0 %vm589_vm14, %v1731_v62 }
 0x135   : > { %1736 = vmatmul.msk.f32.vlgmr.msra.gmra.mxu2 %vm589_vm14, %v1732_v0 }
 0x136   : > { %v2209_v3 = vpop.permute.xlu0 %676  ;;  %768 = vmatpush.msrb.mxu2 %v716_v52 }
 0x138   : > { %769 = vmatpush.msrb.mxu2 %v715_v51 }
 0x13c   : > { %620 = vxpose.xlu2.b32.end [2/2] (short) (narrow) %v586_v56, 8 }
 0x13d   : > { %1744 = vmatmul.msk.f32.vlgmr.msrb.gmra.mxu2 %vm589_vm14, %v2209_v3 }
 0x13e   : > { %v914_v16 = vpop.permute.xlu0 %913 }
 0x13f   : > { %v2227_v8 = vmul.f32 %v914_v16, %v2176_v47 }
 0x140   : > { %v2219_v4 = vpop.permute.xlu1 %678 }
 0x145   : > { %1745 = vmatmul.msk.f32.gmra.mxu2 %vm589_vm14, %v2219_v4 }
 0x147   : > { %v725_v5 = vpop.permute.xlu0 %724 }
 0x148   : > { %v910_v6 = vpop.permute.xlu1 %909  ;;  %v2224_v7 = vmul.f32 %v725_v5, %v2176_v47 }
 0x149   : > { %v2230_v9 = vmul.f32 %v910_v6, %v2171_v37 }
 0x14a   : > { %809 = vmatpush.msra.mxu0 %v2224_v7 }
 0x14b   : > { %v1846_v10 = vpack.i.bf16 %v2230_v9, %v2227_v8 }
 0x14d   : > { %1847 = vrot.lane.b32.xlu1 %v1846_v10, %s2007_s28 }
 0x14f   : > { %v2281_v49 = vpop.permute.xlu0 %1842 }
 0x151   : > { %v1079_v11 = vpop.permute.xlu1 %1078 }
 0x152   : > { %v2237_v13 = vmul.f32 %v1079_v11, %v2176_v47 }
 0x159   : > { %v1075_v12 = vpop.permute.xlu1 %1074 }
 0x15a   : > { %v2240_v14 = vmul.f32 %v1075_v12, %v2171_v37 }
 0x15c   : > { %v1851_v15 = vpack.i.bf16 %v2240_v14, %v2237_v13 }
 0x15e   : > { %1852 = vrot.lane.b32.xlu0 %v1851_v15, %s2001_s25 }
 0x162   : > { %v2245_v19 = vpop.permute.xlu1 %1241 }
 0x16b   : > { %v720_v20 = vpop.permute.xlu1 %719 }
 0x16c   : > { %v2248_v22 = vmul.f32 %v720_v20, %v2171_v37 }
 0x16e   : > { %810 = vmatpush.msra.mxu0 %v2248_v22 }
 0x173   : > { %v1838_v28 = vpop.permute.xlu1 %1837 }
 0x174   : > { %v1839_v51 = vunpack.i.l.bf16 %v1838_v28  ;;  %v1840_v55 = vunpack.i.h.bf16 %v1838_v28 }
 0x19e   : > { %1833 = vset.pattern.permute.xlu2 %v2006_v50 }
 0x1a5   : > { %1237 = vperm.xlu2 %1833, %v2167_v30   ;;  %v2012_v30 = vmov 2  }
 0x1ad   : > { %1883 = vset.pattern.permute.xlu2 %v2010_v24 }
 0x1b1   : > { %v613_v25 = vpop.f32.mrf.mxu0 }
 0x1b2   : > { %v750_v27 = vmul.f32 1.442695, %v613_v25  ;;  %731 = vperm.xlu0 %1856, %v613_v25   ;;  %919 = vperm.xlu1 %1857, %v613_v25  }
 0x1b4   : > { %1926 = vpow2.f32 %v750_v27 }
 0x1b8   : > { %v2256_v31 = vpop.f32.mrf.mxu2 }
 0x1b9   : > { %v752_v32 = vmul.f32 1.442695, %v2256_v31  ;;  %v818_v33 = vperm.slane %v2256_v31, 7 }
 0x1ba   : > { %v2260_v34 = vpop.eup %1926  ;;  %1859 = vset.pattern.permute.xlu0 %v2011_v21  ;;  %1858 = vset.pattern.permute.xlu1 %v2012_v30 }
 0x1bb   : > { %1928 = vpow2.f32 %v752_v32  ;;  %v819_v35 = vsub.f32 %v818_v33, %v613_v25  ;;  %1247 = vperm.xlu0 %1859, %v613_v25   ;;  %969 = vperm.xlu2 %1883, %v2260_v34   ;;  %v820_v57 = vsub.f32 %v818_v33, %v2256_v31 }
 0x1bc   : > { %1084 = vperm.xlu1 %1858, %v613_v25  }
 0x1bd   : > { %v821_v38 = vmul.f32 1.442695, %v819_v35  ;;  %v823_v1 = vmul.f32 1.442695, %v820_v57 }
 0x1bf   : > { %v1848_v39 = vpop.permute.xlu1 %1847  ;;  %1930 = vpow2.f32 %v821_v38 }
 0x1c0   : > { %v1849_v40 = vunpack.i.l.bf16 %v1848_v39  ;;  %v1850_v43 = vunpack.i.h.bf16 %v1848_v39  ;;  %1932 = vpow2.f32 %v1451_v41 }
 0x1c1   : > { %v2266_v42 = vpop.eup %1928  ;;  %1934 = vpow2.f32 %v1453_v48 }
 0x1c2   : > { %1006 = vmatpush.msra.mxu2 %v1849_v40  ;;  %v2269_v44 = vrot.slane %v2266_v42, 7 }
 0x1c3   : > { %1885 = vset.pattern.permute.xlu2 %v2011_v21  ;;  %1864 = vset.pattern.permute.xlu0 %v2010_v24 }
 0x1c4   : > { %1007 = vmatpush.msra.mxu2 %v1850_v43  ;;  %1860 = vset.pattern.permute.xlu1 %v2009_v23  ;;  %1776 = vpush %v2269_v44 }
 0x1c5   : > { %v2276_v46 = vpop.eup %1930  ;;  %1295 = vperm.xlu2 %1885, %v2260_v34   ;;  %736 = vperm.xlu1 %1860, %v2256_v31  }
 0x1c6   : > { %1023 = vperm.xlu0 %1864, %v2276_v46   ;;  %v1933_v50 = vpop.eup %1932 }
 0x1c7   : > { %v1459_v52 = vadd.f32 1.0, %v1933_v50  ;;  %v1935_v56 = vpop.eup %1934 }
 0x1c8   : > { %v1460_v62 = vadd.f32 1.0, %v1935_v56 }
 0x1c9   : > { %1936 = vrcp.f32 %v1459_v52  ;;  %vm1468_vm3 = vweird.f32 %v1459_v52  ;;  %v1474_v20 = vand.u32 2147483648, %v1459_v52  ;;  %v1472_v27 = vand.u32 2147483647, %v1459_v52 }
 0x1ca   : > { %1938 = vrcp.f32 %v1460_v62  ;;  %v1489_v38 = vand.u32 2147483648, %v1460_v62  ;;  %vm1483_vm8 = vweird.f32 %v1460_v62  ;;  %v1487_v40 = vand.u32 2147483647, %v1460_v62 }
 0x1cb   : > { %1940 = vpow2.f32 %v823_v1  ;;  %v1475_v32 = vor.u32 1.1754944e-38, %v1474_v20  ;;  %vm1473_vm6 = vcmp.eq.f32.partialorder %v1472_v27, 8.507059e+37 }
 0x1cc   : > { %v1490_v43 = vor.u32 1.1754944e-38, %v1489_v38  ;;  %vm1488_vm10 = vcmp.eq.f32.partialorder %v1487_v40, 8.507059e+37 }
 0x1cd   : > { %1886 = vset.pattern.permute.xlu2 %v2010_v24  ;;  %v635_v54 = vpop.trf.xlu2  ;;  %1861 = vset.pattern.permute.xlu1 %v2010_v24 }
 0x1ce   : > { %1866 = vset.pattern.permute.xlu0 %v2009_v23  ;;  %973 = vperm.xlu2 %1886, %v2266_v42  }
 0x1cf   : > { %1739 = vmatmul.msk.f32.vlgmr.msra.gmra.mxu3 %vm589_vm14, %v635_v54  ;;  %923 = vperm.xlu1 %1861, %v2256_v31   ;;  %v1937_v0 = vpop.eup %1936 }
 0x1d0   : > { %833 = vperm.xlu0 %1866, %v2276_v46   ;;  %959 = vmatpush.msra.mxu3 %v1839_v51  ;;  %v1853_v58 = vpop.permute.xlu0 %1852  ;;  %v1464_v5 = vmul.f32 %v1937_v0, %v1459_v52  ;;  %v1939_v10 = vpop.eup %1938  ;;  %vm1469_vm4 = vweird.f32 %v1937_v0 }
 0x1d1   : > { %v1854_v63 = vunpack.i.l.bf16 %v1853_v58  ;;  %v1855_v16 = vunpack.i.h.bf16 %v1853_v58  ;;  %v2301_v11 = vpop.eup %1940  ;;  %v1479_v15 = vmul.f32 %v1939_v10, %v1460_v62  ;;  %vm1470_vm5 = vmor %vm1468_vm3, %vm1469_vm4  ;;  %vm1484_vm7 = vweird.f32 %v1939_v10 }
 0x1d2   : > { %960 = vmatpush.msra.mxu3 %v1840_v55  ;;  %v1465_v6 = vsub.f32 1.0, %v1464_v5  ;;  %vm1485_vm9 = vmor %vm1483_vm8, %vm1484_vm7 }
 0x1d3   : > { %v1480_v28 = vsub.f32 1.0, %v1479_v15 }
 0x1d4   : > { %v1466_v12 = vmul.f32 %v1937_v0, %v1465_v6 }
 0x1d5   : > { %v1481_v33 = vmul.f32 %v1939_v10, %v1480_v28 }
 0x1d6   : > { %1887 = vset.pattern.permute.xlu2 %v2011_v21  ;;  %v1467_v25 = vadd.f32 %v1937_v0, %v1466_v12 }
 0x1d7   : > { %1742 = vmatmul.msk.f32.vlgmr.msrb.gmra.mxu3 %vm589_vm14, %v2209_v3  ;;  %1862 = vset.pattern.permute.xlu1 %v2012_v30  ;;  %v1482_v36 = vadd.f32 %v1939_v10, %v1481_v33 }
 0x1d8   : > { %1169 = vmatpush.msrb.mxu3 %v1854_v63  ;;  %1299 = vperm.xlu2 %1887, %v2266_v42  }
 0x1d9   : > { %1088 = vperm.xlu1 %1862, %v2256_v31   ;;  %1872 = vset.pattern.permute.xlu0 %v2011_v21  ;;  %v1486_v41 = vsel %vm1485_vm9, %v1939_v10, %v1482_v36 }
 0x1da   : > { %1170 = vmatpush.msrb.mxu3 %v1855_v16  ;;  %v1491_v45 = vsel %vm1488_vm10, %v1490_v43, %v1486_v41 }
 0x1db   : > { %v1524_v48 = vmul.f32 %v1491_v45, %v2143_v18 }
 0x1df   : > { %1743 = vmatmul.msk.f32.gmra.mxu3 %vm589_vm14, %v2219_v4 }
 0x1e0   : > { %1889 = vset.pattern.permute.xlu2 %v2012_v30 }
 0x1e1   : > { %1863 = vset.pattern.permute.xlu1 %v2010_v24  ;;  %1186 = vperm.xlu2 %1889, %v2276_v46   ;;  %v1471_v24 = vsel %vm1470_vm5, %v1937_v0, %v1467_v25 }
 0x1e2   : > { %1027 = vperm.xlu1 %1863, %v2301_v11   ;;  %v1476_v35 = vsel %vm1473_vm6, %v1475_v32, %v1471_v24  ;;  %vm1427_vm6 = vcmask 392192  }
 0x1e3   : > { %v1523_v39 = vmul.f32 %v1476_v35, %v2141_v17 }
 0x1e7   : > { %1750 = vmatmul.msk.f32.vlgmr.msra.gmra.mxu3 %vm589_vm14, %v2209_v3 }
 0x1e9   : > { %1891 = vset.pattern.permute.xlu2 %v2009_v23 }
 0x1ea   : > { %1865 = vset.pattern.permute.xlu1 %v2009_v23  ;;  %779 = vperm.xlu2 %1891, %v2260_v34  }
 0x1eb   : > { %838 = vperm.xlu1 %1865, %v2301_v11  }
 0x1ef   : > { %1751 = vmatmul.msk.f32.gmra.mxu3 %vm589_vm14, %v2219_v4 }
 0x1f2   : > { %1531 = vrot.lane.b32.xlu2 %v1523_v39, %s1998_s20 }
 0x1fa   : > { %1533 = vrot.lane.b32.xlu2 %v1524_v48, %s1998_s20 }
 0x220   : > { %845 = vxpose.xlu1.b32.start [1/2] (short) (narrow) %v2189_v59, 16 }
 0x224   : > { %v920_v50 = vpop.permute.xlu1 %919  ;;  %v732_v52 = vpop.permute.xlu0 %731 }
 0x228   : > { %846 = vxpose.xlu1.b32.end [2/2] (short) (narrow) %v2206_v2, 16 }
 0x22d   : > { %v1248_v55 = vpop.permute.xlu0 %1247 }
 0x22e   : > { %v1085_v51 = vpop.permute.xlu1 %1084 }
 0x237   : > { %v737_v17 = vpop.permute.xlu1 %736 }
 0x238   : > { %v1024_v58 = vpop.permute.xlu0 %1023 }
 0x239   : > { %v1030_v16 = vmul.f32 %v1024_v58, %v2230_v9 }
 0x241   : > { %v924_v54 = vpop.permute.xlu1 %923 }
 0x242   : > { %v834_v39 = vpop.permute.xlu0 %833 }
 0x24b   : > { %v1089_v56 = vpop.permute.xlu1 %1088 }
 0x252   : > { %v2320_v57 = vpop.f32.mrf.mxu3 }
 0x253   : > { %v739_v62 = vperm.slane %v2320_v57, 0  ;;  %v926_v18 = vperm.slane %v2320_v57, 1  ;;  %v1091_v63 = vperm.slane %v2320_v57, 2  ;;  %v1254_v59 = vperm.slane %v2320_v57, 3 }
 0x254   : > { %v1028_v0 = vpop.permute.xlu1 %1027 }
 0x255   : > { %v740_v1 = vsub.f32 %v732_v52, %v739_v62  ;;  %v927_v2 = vsub.f32 %v920_v50, %v926_v18  ;;  %v1092_v5 = vsub.f32 %v1085_v51, %v1091_v63  ;;  %v1031_v6 = vmul.f32 %v1028_v0, %v2227_v8 }
 0x256   : > { %v741_v10 = vsub.f32 %v737_v17, %v739_v62  ;;  %v1255_v20 = vsub.f32 %v1248_v55, %v1254_v59  ;;  %v928_v28 = vsub.f32 %v924_v54, %v926_v18  ;;  %v1093_v35 = vsub.f32 %v1089_v56, %v1091_v63 }
 0x257   : > { %v742_v12 = vsel %vm2191_vm12, %v740_v1, -1e+30  ;;  %v929_v15 = vsel %vm2191_vm12, %v927_v2, -1e+30  ;;  %v1867_v27 = vpack.i.bf16 %v1030_v16, %v1031_v6  ;;  %v1094_v9 = vsel %vm2191_vm12, %v1092_v5, -1e+30 }
 0x258   : > { %v744_v25 = vmul.f32 1.442695, %v742_v12  ;;  %v931_v32 = vmul.f32 1.442695, %v929_v15  ;;  %v1096_v24 = vmul.f32 1.442695, %v1094_v9  ;;  %v841_v50 = vmul.f32 %v834_v39, %v2248_v22 }
 0x259   : > { %1868 = vrot.lane.b32.xlu0 %v1867_v27, %s2007_s28  ;;  %v1257_v8 = vsel %vm2191_vm12, %v1255_v20, -1e+30  ;;  %v743_v33 = vsel %vm2195_vm13, %v741_v10, -1e+30  ;;  %v930_v40 = vsel %vm2195_vm13, %v928_v28, -1e+30  ;;  %v1844_v17 = vunpack.i.l.bf16 %v2281_v49  ;;  %s1777_s28 = spop %1776 }
 0x25a   : > { %1942 = vpow2.f32 %v744_v25  ;;  %v709_v36 = vpop.f32.mrf.mxu3  ;;  %v1259_v38 = vmul.f32 1.442695, %v1257_v8  ;;  %v746_v43 = vmul.f32 1.442695, %v743_v33  ;;  %v1095_v60 = vsel %vm2195_vm13, %v1093_v35, -1e+30 }
 0x25b   : > { %1944 = vpow2.f32 %v931_v32  ;;  %v933_v51 = vmul.f32 1.442695, %v930_v40  ;;  %v1098_v55 = vmul.f32 1.442695, %v1095_v60  ;;  %v2370_v10 = vmul.f32 %v2245_v19, %v2176_v47 }
 0x25c   : > { %1946 = vpow2.f32 %v1096_v24 }
 0x25d   : > { %v839_v41 = vpop.permute.xlu1 %838  ;;  %1948 = vpow2.f32 %v1259_v38 }
 0x25e   : > { %v842_v45 = vmul.f32 %v839_v41, %v2224_v7  ;;  %1950 = vpow2.f32 %v746_v43  ;;  %v1845_v7 = vunpack.i.h.bf16 %v2281_v49  ;;  %v1238_v49 = vpop.permute.xlu2 %1237 }
 0x25f   : > { %1952 = vpow2.f32 %v933_v51  ;;  %v2364_v5 = vmul.f32 %v1238_v49, %v2171_v37 }
 0x260   : > { %v1943_v48 = vpop.eup %1942  ;;  %897 = vmatpush.msrb.mxu1 %v842_v45  ;;  %1954 = vpow2.f32 %v1098_v55 }
 0x261   : > { %v748_v52 = vmul.f32 %v1943_v48, %v709_v36  ;;  %v1945_v54 = vpop.eup %1944  ;;  %1251 = vperm.xlu0 %1872, %v2256_v31  }
 0x262   : > { %898 = vmatpush.msrb.mxu1 %v841_v50  ;;  %v935_v56 = vmul.f32 %v1945_v54, %v709_v36  ;;  %v1947_v58 = vpop.eup %1946  ;;  %v2352_v18 = vpop.f32.mrf.mxu3 }
 0x263   : > { %1746 = vmatmul.msk.f32.vlgmr.msra.gmra.mxu0 %vm589_vm14, %v748_v52  ;;  %v1100_v22 = vmul.f32 %v1947_v58, %v709_v36  ;;  %v1949_v62 = vpop.eup %1948 }
 0x264   : > { %1122 = vmatpush.msra.mxu1 %v1844_v17  ;;  %1752 = vmatmul.msk.f32.vlgmr.msra.gmra.mxu2 %vm589_vm14, %v935_v56  ;;  %v2355_v31 = vmul.f32 %v1949_v62, %v709_v36  ;;  %v1951_v63 = vpop.eup %1950  ;;  %v1450_v62 = vsub.f32 0.0, %v2159_v29 }
 0x265   : > { %1758 = vmatmul.msk.f32.vlgmr.msrb.gmra.mxu3 %vm589_vm14, %v1100_v22  ;;  %v749_v0 = vmul.f32 %v1951_v63, %v2352_v18  ;;  %v1953_v1 = vpop.eup %1952  ;;  %v1449_v22 = vsub.f32 0.0, %v2157_v26 }
 0x266   : > { %1123 = vmatpush.msra.mxu1 %v1845_v7  ;;  %v936_v2 = vmul.f32 %v1953_v1, %v2352_v18  ;;  %v1955_v16 = vpop.eup %1954 }
 0x267   : > { %v1101_v6 = vmul.f32 %v1955_v16, %v2352_v18 }
 0x269   : > { %1874 = vrot.lane.b32.xlu0 %v2185_v53, %s2013_s29  ;;  %v1878_v53 = vpack.i.bf16 %v2364_v5, %v2370_v10 }
 0x26a   : > { %1884 = vset.pattern.permute.xlu0 %v2012_v30  ;;  %v962_v28 = vpop.f32.mrf.mxu3 }
 0x26b   : > { %1747 = vmatmul.msk.f32.gmra.mxu0 %vm589_vm14, %v749_v0 }
 0x26c   : > { %1753 = vmatmul.msk.f32.gmra.mxu2 %vm589_vm14, %v936_v2 }
 0x26d   : > { %1759 = vmatmul.msk.f32.gmra.mxu3 %vm589_vm14, %v1101_v6 }
 0x271   : > { %1879 = vrot.lane.b32.xlu0 %v1878_v53, %s2013_s29 }
 0x272   : > { %v965_v61 = vpop.f32.mrf.mxu3 }
 0x279   : > { %1132 = vperm.xlu0 %1884, %v2260_v34  }
 0x27b   : > { %1888 = vset.pattern.permute.xlu1 %v2011_v21 }
 0x281   : > { %1136 = vperm.xlu0 %1884, %v2266_v42  }
 0x282   : > { %1353 = vperm.xlu1 %1888, %v2301_v11  }
 0x289   : > { %1190 = vperm.xlu0 %1884, %v2301_v11  }
 0x28a   : > { %1015 = vrot.lane.b32.xlu1 %v2269_v44, %s2014_s13 }
 0x291   : > { %1890 = vset.pattern.permute.xlu0 %v2011_v21 }
 0x292   : > { %1178 = vrot.lane.b32.xlu1 %v2269_v44, %s2015_s14  ;;  %1349 = vperm.xlu0 %1890, %v2276_v46  }
 0x29a   : > { %1341 = vrot.lane.b32.xlu1 %v2269_v44, %s2016_s15  ;;  %1892 = vset.pattern.permute.xlu0 %v2009_v23 }
 0x29b   : > { %784 = vperm.xlu0 %1892, %v2266_v42   ;;  %v970_v42 = vpop.permute.xlu2 %969 }
 0x29c   : > { %v976_v24 = vmul.f32 %v970_v42, %v962_v28 }
 0x2a3   : > { %1903 = vset.pattern.permute.xlu0 %v2011_v21  ;;  %v2401_v21 = vpop.f32.mrf.mxu2  ;;  %v2413_v9 = vpop.permute.xlu2 %1295 }
 0x2ab   : > { %v774_v25 = vpop.f32.mrf.mxu2  ;;  %v974_v38 = vpop.permute.xlu2 %973 }
 0x2ac   : > { %v977_v39 = vmul.f32 %v974_v38, %v965_v61 }
 0x2c4   : > { %v2389_v19 = vpop.trf.xlu1 }
 0x2c5   : > { %1748 = vmatmul.msk.f32.vlgmr.msrb.gmra.mxu1 %vm589_vm14, %v2389_v19 }
 0x2cb   : > { %v1869_v34 = vpop.permute.xlu0 %1868 }
 0x2cc   : > { %v2393_v30 = vpop.trf.xlu1  ;;  %v1870_v11 = vunpack.i.l.bf16 %v1869_v34  ;;  %v1871_v46 = vunpack.i.h.bf16 %v1869_v34 }
 0x2cd   : > { %1749 = vmatmul.msk.f32.gmra.mxu1 %vm589_vm14, %v2393_v30 }
 0x2ce   : > { %1054 = vmatpush.msrb.mxu0 %v1870_v11 }
 0x2d0   : > { %1055 = vmatpush.msrb.mxu0 %v1871_v46 }
 0x2d1   : > { %1754 = vmatmul.msk.f32.vlgmr.msrb.gmra.mxu0 %vm589_vm14, %v2389_v19 }
 0x2d3   : > { %v1252_v23 = vpop.permute.xlu0 %1251 }
 0x2d4   : > { %v1256_v44 = vsub.f32 %v1252_v23, %v1254_v59 }
 0x2d5   : > { %1756 = vmatmul.msk.f32.vlgmr.msra.gmra.mxu1 %vm589_vm14, %v2209_v3 }
 0x2d6   : > { %v1258_v27 = vsel %vm2195_vm13, %v1256_v44, -1e+30 }
 0x2d7   : > { %v1261_v32 = vmul.f32 1.442695, %v1258_v27 }
 0x2d9   : > { %1755 = vmatmul.msk.f32.gmra.mxu0 %vm589_vm14, %v2393_v30  ;;  %1956 = vpow2.f32 %v1261_v32 }
 0x2db   : > { %v1875_v12 = vpop.permute.xlu0 %1874 }
 0x2dc   : > { %v1876_v15 = vunpack.i.l.bf16 %v1875_v12  ;;  %v1877_v20 = vunpack.i.h.bf16 %v1875_v12 }
 0x2dd   : > { %1757 = vmatmul.msk.f32.gmra.mxu1 %vm589_vm14, %v2219_v4 }
 0x2de   : > { %1285 = vmatpush.msra.mxu0 %v1876_v15 }
 0x2df   : > { %v1957_v36 = vpop.eup %1956 }
 0x2e0   : > { %1286 = vmatpush.msra.mxu0 %v1877_v20  ;;  %v1264_v41 = vmul.f32 %v1957_v36, %v2352_v18  ;;  %v2429_v17 = vpop.f32.mrf.mxu0  ;;  %v1455_v18 = vmul.f32 1.442695, %v1449_v22 }
 0x2e1   : > { %1762 = vmatmul.msk.f32.vlgmr.msra.gmra.mxu0 %vm589_vm14, %v2209_v3 }
 0x2e2   : > { %1958 = vpow2.f32 %v1455_v18 }
 0x2e3   : > { %v1880_v57 = vpop.permute.xlu0 %1879 }
 0x2e4   : > { %v1881_v59 = vunpack.i.l.bf16 %v1880_v57  ;;  %v1882_v8 = vunpack.i.h.bf16 %v1880_v57 }
 0x2e6   : > { %1332 = vmatpush.msrb.mxu1 %v1881_v59 }
 0x2e7   : > { %v1009_v33 = vpop.f32.mrf.mxu2 }
 0x2e8   : > { %v1010_v35 = vadd.f32 %v1009_v33, %v976_v24  ;;  %1333 = vmatpush.msrb.mxu1 %v1882_v8  ;;  %v815_v7 = vpop.f32.mrf.mxu0  ;;  %v1959_v0 = vpop.eup %1958 }
 0x2e9   : > { %1763 = vmatmul.msk.f32.gmra.mxu0 %vm589_vm14, %v2219_v4  ;;  %1764 = vmatmul.msk.f32.vlgmr.msrb.gmra.mxu1 %vm589_vm14, %v2355_v31  ;;  %v1457_v31 = vmul.f32 1.442695, %v1450_v62  ;;  %v1461_v6 = vadd.f32 1.0, %v1959_v0  ;;  %v1172_v53 = vpop.f32.mrf.mxu3 }
 0x2ea   : > { %1401 = vrot.lane.b32.xlu2 %v1010_v35, %s2017_s17 }
 0x2eb   : > { %v1133_v3 = vpop.permute.xlu0 %1132  ;;  %1960 = vpow2.f32 %v1457_v31  ;;  %vm1498_vm11 = vweird.f32 %v1461_v6  ;;  %v1502_v35 = vand.u32 2147483647, %v1461_v6  ;;  %v1504_v61 = vand.u32 2147483648, %v1461_v6 }
 0x2ec   : > { %1962 = vrcp.f32 %v1461_v6 }
 0x2ed   : > { %vm1503_vm4 = vcmp.eq.f32.partialorder %v1502_v35, 8.507059e+37 }
 0x2ef   : > { %v1012_v40 = vpop.f32.mrf.mxu2 }
 0x2f0   : > { %v1013_v43 = vadd.f32 %v1012_v40, %v977_v39 }
 0x2f1   : > { %1765 = vmatmul.msk.f32.gmra.mxu1 %vm589_vm14, %v1264_v41  ;;  %v1961_v1 = vpop.eup %1960  ;;  %v1175_v41 = vpop.f32.mrf.mxu3 }
 0x2f2   : > { %1403 = vrot.lane.b32.xlu0 %v1013_v43, %s2017_s17  ;;  %v1462_v34 = vadd.f32 1.0, %v1961_v1  ;;  %v1963_v23 = vpop.eup %1962 }
 0x2f3   : > { %v1137_v4 = vpop.permute.xlu0 %1136  ;;  %v1494_v15 = vmul.f32 %v1963_v23, %v1461_v6  ;;  %vm1499_vm12 = vweird.f32 %v1963_v23 }
 0x2f4   : > { %v2423_v45 = vpop.permute.xlu1 %1353  ;;  %1964 = vrcp.f32 %v1462_v34  ;;  %vm2445_vm15 = vmor %vm1498_vm11, %vm1499_vm12  ;;  %vm1513_vm2 = vweird.f32 %v1462_v34 }
 0x2fa   : > { %v1965_v42 = vpop.eup %1964 }
 0x2fb   : > { %v2425_v60 = vpop.permute.xlu0 %1190  ;;  %v1509_v20 = vmul.f32 %v1965_v42, %v1462_v34  ;;  %vm1514_vm13 = vweird.f32 %v1965_v42 }
 0x2fc   : > { %v1016_v48 = vpop.permute.xlu1 %1015  ;;  %vm1515_vm3 = vmor %vm1513_vm2, %vm1514_vm13  ;;  %v1194_v0 = vmul.f32 %v2425_v60, %v2237_v13 }
 0x2fd   : > { %1778 = vpush %v1016_v48  ;;  %v1510_v27 = vsub.f32 1.0, %v1509_v20  ;;  %v1517_v48 = vand.u32 2147483647, %v1462_v34 }
 0x2ff   : > { %v1511_v24 = vmul.f32 %v1965_v42, %v1510_v27  ;;  %vm1518_vm5 = vcmp.eq.f32.partialorder %v1517_v48, 8.507059e+37 }
 0x301   : > { %v1512_v38 = vadd.f32 %v1965_v42, %v1511_v24 }
 0x304   : > { %v1179_v50 = vpop.permute.xlu1 %1178  ;;  %v2427_v51 = vpop.permute.xlu0 %1349 }
 0x305   : > { %1780 = vpush %v1179_v50  ;;  %v1356_v1 = vmul.f32 %v2427_v51, %v2364_v5 }
 0x30c   : > { %v1342_v52 = vpop.permute.xlu1 %1341 }
 0x30d   : > { %1782 = vpush %v1342_v52  ;;  %v785_v54 = vpop.permute.xlu0 %784 }
 0x30e   : > { %v788_v55 = vmul.f32 %v785_v54, %v774_v25  ;;  %v1495_v25 = vsub.f32 1.0, %v1494_v15  ;;  %v1505_v54 = vor.u32 1.1754944e-38, %v1504_v61 }
 0x310   : > { %v2431_v56 = vadd.f32 %v815_v7, %v788_v55  ;;  %v1496_v59 = vmul.f32 %v1963_v23, %v1495_v25  ;;  %v1516_v55 = vsel %vm1515_vm3, %v1965_v42, %v1512_v38 }
 0x312   : > { %v1497_v36 = vadd.f32 %v1963_v23, %v1496_v59 }
 0x342   : > { %v2433_v58 = vpop.f32.mrf.mxu1 }
 0x34a   : > { %v2437_v63 = vpop.f32.mrf.mxu1 }
 0x34e   : > { %v1057_v49 = vpop.f32.mrf.mxu0 }
 0x34f   : > { %1065 = vrot.lane.b32.xlu1 %v1057_v49, %s2017_s17 }
 0x352   : > { %v1125_v2 = vpop.f32.mrf.mxu1 }
 0x353   : > { %v1139_v16 = vmul.f32 %v1133_v3, %v1125_v2  ;;  %v1300_v3 = vpop.permute.xlu2 %1299 }
 0x355   : > { %v1173_v11 = vadd.f32 %v1172_v53, %v1139_v16  ;;  %v1357_v16 = vmul.f32 %v2423_v45, %v2370_v10 }
 0x356   : > { %v2440_v46 = vpop.f32.mrf.mxu0 }
 0x357   : > { %1409 = vrot.lane.b32.xlu0 %v1173_v11, %s1998_s20 }
 0x35a   : > { %v1128_v44 = vpop.f32.mrf.mxu1 }
 0x35b   : > { %v1140_v33 = vmul.f32 %v1137_v4, %v1128_v44  ;;  %v1501_v4 = vsel %vm2445_vm15, %v1963_v23, %v1497_v36  ;;  %v1187_v49 = vpop.permute.xlu2 %1186 }
 0x35c   : > { %v1506_v22 = vsel %vm1503_vm4, %v1505_v54, %v1501_v4  ;;  %v1193_v2 = vmul.f32 %v1187_v49, %v2240_v14  ;;  %v1906_v14 = vld [vmem:[%s2573_s6] ss:$0 sm:$0xff]  ;;  %v1595_v54 = vld [vmem:[%s2575_s8 + $0x18] sm:$0xff]  ;;  %v1594_v4 = vld [vmem:[%s2575_s8 + $0x10] sm:$0xff] }
 0x35d   : > { %v1176_v50 = vadd.f32 %v1175_v41, %v1140_v33  ;;  %v1525_v18 = vmul.f32 %v1506_v22, %v2157_v26  ;;  %v1898_v26 = vpack.i.bf16 %v1356_v1, %v1357_v16  ;;  %v1443_v51 = vmul.f32 %v1906_v14, %v2171_v37  ;;  %v1592_v22 = vld [vmem:[%s2575_s8] sm:$0xff] }
 0x35e   : > { %v1288_v12 = vpop.f32.mrf.mxu0  ;;  %v1893_v6 = vpack.i.bf16 %v1193_v2, %v1194_v0  ;;  %v1444_v33 = vmul.f32 %v1906_v14, %v2176_v47 }
 0x35f   : > { %v1302_v28 = vmul.f32 %v2413_v9, %v1288_v12  ;;  %v1519_v9 = vand.u32 2147483648, %v1462_v34 }
 0x361   : > { %v1520_v7 = vor.u32 1.1754944e-38, %v1519_v9 }
 0x363   : > { %v1521_v62 = vsel %vm1518_vm5, %v1520_v7, %v1516_v55  ;;  %v1593_v7 = vld [vmem:[%s2575_s8 + $0x8] sm:$0xff] }
 0x364   : > { %v1526_v31 = vmul.f32 %v1521_v62, %v2159_v29  ;;  %v780_v29 = vpop.permute.xlu2 %779  ;;  %v1404_v23 = vpop.permute.xlu0 %1403 }
 0x365   : > { %v787_v60 = vmul.f32 %v780_v29, %v2401_v21  ;;  %v1424_v59 = vsel %vm589_vm14, %v2431_v56, %v1404_v23  ;;  %v1907_v29 = vld [vmem:[%s2574_s7] ss:$0 sm:$0xff] }
 0x366   : > { %v1335_v32 = vpop.f32.mrf.mxu1  ;;  %v1291_v8 = vpop.f32.mrf.mxu0 }
 0x367   : > { %v1336_v57 = vadd.f32 %v1335_v32, %v1302_v28  ;;  %v1303_v39 = vmul.f32 %v1300_v3, %v1291_v8  ;;  %v813_v5 = vadd.f32 %v2429_v17, %v787_v60 }
 0x369   : > { %1417 = vrot.lane.b32.xlu2 %v1336_v57, %s2002_s26 }
 0x36c   : > { %v1532_v53 = vpop.permute.xlu2 %1531 }
 0x36e   : > { %v1338_v43 = vpop.f32.mrf.mxu1 }
 0x36f   : > { %v1339_v52 = vadd.f32 %v1338_v43, %v1303_v39  ;;  %v1599_v43 = vld [vmem:[%s2575_s8 + $0x38] sm:$0xff] }
 0x371   : > { %1411 = vrot.lane.b32.xlu2 %v1176_v50, %s1998_s20  ;;  %1419 = vrot.lane.b32.xlu0 %v1339_v52, %s2002_s26  ;;  %v1598_v50 = vld [vmem:[%s2575_s8 + $0x30] sm:$0xff]  ;;  %v1596_v52 = vld [vmem:[%s2575_s8 + $0x20] sm:$0xff] }
 0x374   : > { %v1534_v34 = vpop.permute.xlu2 %1533 }
 0x375   : > { %v1539_v21 = vsel %vm394_vm0, %v1532_v53, %v1534_v34 }
 0x379   : > { %1535 = vrot.lane.b32.xlu2 %v1525_v18, %s1998_s20  ;;  %1537 = vrot.lane.b32.xlu0 %v1526_v31, %s1998_s20 }
 0x37c   : > { %v1402_v11 = vpop.permute.xlu2 %1401 }
 0x37d   : > { %v1423_v10 = vsel %vm589_vm14, %v813_v5, %v1402_v11 }
 0x381   : > { %1894 = vrot.lane.b32.xlu2 %v1893_v6, %s2001_s25  ;;  %1899 = vrot.lane.b32.xlu0 %v1898_v26, %s2013_s29  ;;  %s1779_s29 = spop %1778 }
 0x382   : > { %s1781_s13 = spop %1780 }
 0x383   : > { %s1783_s14 = spop %1782 }
 0x3c3   : > { %v1418_v13 = vpop.permute.xlu2 %1417 }
 0x3c9   : > { %v1410_v45 = vpop.permute.xlu0 %1409 }
 0x3ca   : > { %v1425_v42 = vsel %vm394_vm0, %v1423_v10, %v1410_v45 }
 0x3cb   : > { %v1428_v44 = vsel %vm1427_vm6, %v1425_v42, %v1418_v13  ;;  %v1412_v15 = vpop.permute.xlu2 %1411 }
 0x3cc   : > { %v1445_v12 = vadd.f32 %v1443_v51, %v1428_v44  ;;  %v1426_v24 = vsel %vm394_vm0, %v1424_v59, %v1412_v15  ;;  %v827_v59 = vstv %s1777_s28 }
 0x3ce   : > { %v2476_v20 = vmul.f32 %v1539_v21, %v1445_v12 }
 0x3d0   : > { %v1545_v25 = vmul.f32 %v2476_v20, %v2476_v20 }
 0x3d2   : > { %v1547_v17 = vsel %vm376_vm1, %v1545_v25, 0.0 }
 0x3d3   : > { %1548 = vadd.xlane.f32.xlu2 %v1547_v17  ;;  %v1536_v27 = vpop.permute.xlu2 %1535 }
 0x3db   : > { %v1895_v28 = vpop.permute.xlu2 %1894 }
 0x3dc   : > { %v1896_v32 = vunpack.i.l.bf16 %v1895_v28  ;;  %v1897_v37 = vunpack.i.h.bf16 %v1895_v28 }
 0x3de   : > { %1217 = vmatpush.msrb.mxu2 %v1896_v32  ;;  %v1018_v32 = vstv %s1779_s29 }
 0x3e0   : > { %1218 = vmatpush.msrb.mxu2 %v1897_v37 }
 0x3e1   : > { %1760 = vmatmul.msk.f32.vlgmr.msrb.gmra.mxu2 %vm589_vm14, %v2389_v19 }
 0x3e2   : > { %1614 = vmatpush.msra.mxu2 %v1599_v43  ;;  %v1973_v43 = vld [vmem:[#allocation2 + $0x8] sm:$0xff] }
 0x3e3   : > { %v1420_v57 = vpop.permute.xlu0 %1419 }
 0x3e4   : > { %v1429_v8 = vsel %vm1427_vm6, %v1426_v24, %v1420_v57  ;;  %1615 = vmatpush.msra.mxu2 %v1598_v50  ;;  %v1181_v57 = vstv %s1781_s13  ;;  %v1972_v24 = vld [vmem:[#allocation2] sm:$0xff] }
 0x3e5   : > { %v1446_v35 = vadd.f32 %v1444_v33, %v1429_v8  ;;  %v1020_v8 = vmul.f32 %v1972_v24, %v1018_v32 }
 0x3e9   : > { %1761 = vmatmul.msk.f32.gmra.mxu2 %vm589_vm14, %v2393_v30 }
 0x3eb   : > { %1067 = vrot.lane.b32.xlu2 %v2440_v46, %s2017_s17  ;;  %v1538_v61 = vpop.permute.xlu0 %1537  ;;  %v2018_v46 = vmov 64.0  }
 0x3ec   : > { %v1540_v3 = vsel %vm394_vm0, %v1536_v27, %v1538_v61  ;;  %1966 = vrcp.f32 %v2018_v46  ;;  %v1066_v27 = vpop.permute.xlu1 %1065  ;;  %v1344_v61 = vstv %s1783_s14 }
 0x3ed   : > { %v2493_v36 = vmul.f32 %v1540_v3, %v1446_v35  ;;  %v1183_v35 = vmul.f32 %v1972_v24, %v1181_v57  ;;  %v829_v3 = vmul.f32 %v1972_v24, %v827_v59 }
 0x3ef   : > { %v1546_v56 = vmul.f32 %v2493_v36, %v2493_v36 }
 0x3f1   : > { %v1550_v38 = vsel %vm376_vm1, %v1546_v56, 0.0 }
 0x3f2   : > { %1551 = vadd.xlane.f32.xlu0 %v1550_v38  ;;  %v1967_v9 = vpop.eup %1966  ;;  %v1346_v38 = vmul.f32 %v1972_v24, %v1344_v61 }
 0x3f3   : > { %v1900_v39 = vpop.permute.xlu0 %1899  ;;  %v1554_v41 = vmul.f32 64.0, %v1967_v9  ;;  %vm1558_vm7 = vweird.f32 %v1967_v9 }
 0x3f4   : > { %v1901_v47 = vunpack.i.l.bf16 %v1900_v39  ;;  %v1902_v40 = vunpack.i.h.bf16 %v1900_v39  ;;  %v906_v39 = vadd.f32 %v2433_v58, %v829_v3 }
 0x3f5   : > { %v1555_v48 = vsub.f32 1.0, %v1554_v41 }
 0x3f6   : > { %1380 = vmatpush.msra.mxu3 %v1901_v47 }
 0x3f8   : > { %1381 = vmatpush.msra.mxu3 %v1902_v40 }
 0x3f9   : > { %1766 = vmatmul.msk.f32.vlgmr.msra.gmra.mxu3 %vm589_vm14, %v2389_v19  ;;  %v1597_v19 = vld [vmem:[%s2575_s8 + $0x28] sm:$0xff] }
 0x3fa   : > { %1616 = vmatpush.msra.mxu2 %v1597_v19  ;;  %v1184_v19 = vmul.f32 %v1973_v43, %v1181_v57 }
 0x3fc   : > { %1617 = vmatpush.msra.mxu2 %v1596_v52 }
 0x3fe   : > { %1618 = vmatpush.msra.mxu2 %v1595_v54 }
 0x400   : > { %1619 = vmatpush.msra.mxu2 %v1594_v4  ;;  %v1347_v4 = vmul.f32 %v1973_v43, %v1344_v61 }
 0x401   : > { %1767 = vmatmul.msk.f32.gmra.mxu3 %vm589_vm14, %v2393_v30  ;;  %v1556_v30 = vmul.f32 %v1967_v9, %v1555_v48  ;;  %v1021_v48 = vmul.f32 %v1973_v43, %v1018_v32 }
 0x402   : > { %1620 = vmatpush.msra.mxu2 %v1593_v7 }
 0x403   : > { %v1557_v55 = vadd.f32 %v1967_v9, %v1556_v30  ;;  %v830_v30 = vmul.f32 %v1973_v43, %v827_v59 }
 0x404   : > { %1621 = vmatpush.msra.mxu2 %v1592_v22 }
 0x405   : > { %v1559_v62 = vsel %vm1558_vm7, %v1967_v9, %v1557_v55  ;;  %v907_v58 = vadd.f32 %v2437_v63, %v830_v30 }
 0x446   : > { %v1549_v18 = vpop.xlane.xlu2 %1548 }
 0x447   : > { %v1560_v31 = vmul.f32 %v1559_v62, %v1549_v18 }
 0x449   : > { %v1562_v49 = vadd.f32 1e-06, %v1560_v31 }
 0x44b   : > { %1968 = vrsqrt.f32 %v1562_v49  ;;  %vm1570_vm9 = vweird.f32 %v1562_v49 }
 0x44e   : > { %v1068_v9 = vpop.permute.xlu2 %1067 }
 0x44f   : > { %v1072_v52 = vadd.f32 %v1068_v9, %v1021_v48 }
 0x451   : > { %v1969_v0 = vpop.eup %1968  ;;  %v1431_v7 = vsel %vm589_vm14, %v907_v58, %v1072_v52 }
 0x452   : > { %v1565_v1 = vmul.f32 %v1969_v0, %v1562_v49  ;;  %vm1571_vm8 = vweird.f32 %v1969_v0 }
 0x453   : > { %vm1572_vm10 = vmor %vm1570_vm9, %vm1571_vm8 }
 0x454   : > { %v1566_v2 = vmul.f32 %v1969_v0, %v1565_v1 }
 0x456   : > { %v1567_v16 = vmul.f32 0.5, %v1566_v2 }
 0x458   : > { %v1568_v6 = vsub.f32 1.5, %v1567_v16 }
 0x45a   : > { %v1569_v26 = vmul.f32 %v1969_v0, %v1568_v6 }
 0x45c   : > { %v1573_v53 = vsel %vm1572_vm10, %v1969_v0, %v1569_v26 }
 0x45d   : > { %v1584_v34 = vmul.f32 %v1573_v53, %v2476_v20 }
 0x45f   : > { %v1590_v11 = vmul.f32 %v1907_v29, %v1584_v34 }
 0x461   : > { %1768 = vmatmul.msk.f32.vlgmr.msra.gmra.mxu2 %vm376_vm1, %v1590_v11 }
 0x464   : > { %v1220_v23 = vpop.f32.mrf.mxu2 }
 0x465   : > { %1228 = vrot.lane.b32.xlu0 %v1220_v23, %s1998_s20  ;;  %v1552_v13 = vpop.xlane.xlu0 %1551 }
 0x466   : > { %v1561_v60 = vmul.f32 %v1559_v62, %v1552_v13 }
 0x468   : > { %v1563_v14 = vadd.f32 1e-06, %v1561_v60 }
 0x46a   : > { %1970 = vrsqrt.f32 %v1563_v14  ;;  %vm1580_vm12 = vweird.f32 %v1563_v14 }
 0x46c   : > { %v1223_v5 = vpop.f32.mrf.mxu2 }
 0x46d   : > { %1230 = vrot.lane.b32.xlu1 %v1223_v5, %s1998_s20 }
 0x470   : > { %v1971_v10 = vpop.eup %1970 }
 0x471   : > { %v1575_v45 = vmul.f32 %v1971_v10, %v1563_v14  ;;  %vm1581_vm11 = vweird.f32 %v1971_v10 }
 0x472   : > { %vm1582_vm13 = vmor %vm1580_vm12, %vm1581_vm11 }
 0x473   : > { %v1576_v51 = vmul.f32 %v1971_v10, %v1575_v45 }
 0x475   : > { %v1577_v42 = vmul.f32 0.5, %v1576_v51 }
 0x477   : > { %v1578_v44 = vsub.f32 1.5, %v1577_v42 }
 0x479   : > { %v1579_v12 = vmul.f32 %v1971_v10, %v1578_v44 }
 0x47b   : > { %v1583_v15 = vsel %vm1582_vm13, %v1971_v10, %v1579_v12 }
 0x47c   : > { %v1383_v21 = vpop.f32.mrf.mxu3  ;;  %v1585_v20 = vmul.f32 %v1583_v15, %v2493_v36  ;;  %v1071_v36 = vadd.f32 %v1066_v27, %v1020_v8 }
 0x47d   : > { %1391 = vrot.lane.b32.xlu1 %v1383_v21, %s2002_s26 }
 0x47e   : > { %v1591_v25 = vmul.f32 %v1907_v29, %v1585_v20  ;;  %v1430_v40 = vsel %vm589_vm14, %v906_v39, %v1071_v36 }
 0x480   : > { %1769 = vmatmul.msk.f32.gmra.mxu2 %vm376_vm1, %v1591_v25 }
 0x484   : > { %v1386_v17 = vpop.f32.mrf.mxu3 }
 0x485   : > { %1393 = vrot.lane.b32.xlu0 %v1386_v17, %s2002_s26 }
 0x4d7   : > { %v1229_v33 = vpop.permute.xlu0 %1228 }
 0x4d8   : > { %v1234_v56 = vadd.f32 %v1229_v33, %v1183_v35 }
 0x4da   : > { %v1432_v41 = vsel %vm394_vm0, %v1430_v40, %v1234_v56 }
 0x4df   : > { %v1231_v37 = vpop.permute.xlu1 %1230 }
 0x4e0   : > { %v1235_v54 = vadd.f32 %v1231_v37, %v1184_v19 }
 0x4e2   : > { %v1433_v62 = vsel %vm394_vm0, %v1431_v7, %v1235_v54 }
 0x4e4   : > { %v1623_v28 = vpop.f32.mrf.mxu2 }
 0x4e5   : > { %1629 = vst.msk [vmem:[%s2542_s27] sm:$0xff] %vm394_vm0, %v1623_v28 }
 0x4ef   : > { %v1392_v47 = vpop.permute.xlu1 %1391 }
 0x4f0   : > { %v1397_v46 = vadd.f32 %v1392_v47, %v1346_v38 }
 0x4f2   : > { %v1434_v50 = vsel %vm1427_vm6, %v1432_v41, %v1397_v46 }
 0x4f3   : > { %1437 = vst.msk [vmem:[#allocation2] sm:$0xff] %vm376_vm1, %v1434_v50 }
 0x4f7   : > { %v1394_v55 = vpop.permute.xlu0 %1393 }
 0x4f8   : > { %v1398_v22 = vadd.f32 %v1394_v55, %v1347_v4 }
 0x4fa   : > { %v1435_v18 = vsel %vm1427_vm6, %v1433_v62, %v1398_v22 }
 0x4fb   : > { %1438 = vst.msk [vmem:[#allocation2 + $0x8] sm:$0xff] %vm376_vm1, %v1435_v18 }
 0x503   : > { %v1626_v31 = vpop.f32.mrf.mxu2 }
 0x504   : > { %1630 = vst.msk [vmem:[%s2542_s27 + $0x8] sm:$0xff] %vm394_vm0, %v1626_v31 }
 0x505 PF: > { %s19_s11 = sadd.s32 1, %s1996_s11   ;;  %s2583_s30 = smov %s1992_s10 }
 0x506   : > { %p16_p5 = scmp.ge.s32.totalorder %s19_s11, 4   ;;  %s2584_s10 = smov %s2586_s12 }
 0x508   :  { %18 = sbr.rel (!%p16_p5) target bundleno = 2 (0x2), region = 90 }

</bundles_post_ra>
